<compile_context>
chip_gen: v6e
topology: v6e:2x2x1
jax: 0.10.0
libtpu: 0.0.40
codegen_flags: <defaults>
</compile_context>

<pallas_src>
import functools
import math

import jax
import jax.numpy as jnp
from jax.experimental import pallas as pl
from jax.experimental.pallas import tpu as pltpu
from jax.scipy.special import gammaln, digamma

BN_EPS = 1e-5
# Pure Python float -> inlined literal, never a captured traced constant.
BN_EVAL_SCALE = float(1.0 / math.sqrt(1.0 + BN_EPS))  # running_mean=0, var=1
ALPHA_FLOOR = 1e-5
NEG_INF = float("-inf")


# ----------------------------------------------------------------------------
# Fused kernel.
#   Grid: (batch_blocks, 3 phases, V // TV)   (parallel, arbitrary, arbitrary)
#   Phase 0: encoder contraction over V tiles into h_acc; at the last tile,
#            finalize alpha, Dirichlet means, topic embeddings (BN scale
#            folded), init online-softmax stats.
#   Phase 1: per V tile, (B,E)@(E,TV) logits for sem and syn; update running
#            max m and rescaled exp-sum l (online softmax statistics).
#   Phase 2: per V tile, recompute logits and write exp(logit - m) * (1/l).
# ----------------------------------------------------------------------------
def syconetm_kernel(x_ref, w1t_ref, b1_ref, w2t_ref, b2_ref,
                    wtsem_ref, wtsyn_ref, we_ref,
                    alpha_ref, rsem_ref, rsyn_ref,
                    h_acc, tsem, tsyn, m_sem, l_sem, m_syn, l_syn,
                    *, sem_topics):
    p = pl.program_id(1)          # phase
    j = pl.program_id(2)          # V tile index
    nv = pl.num_programs(2)

    # ------------------ phase 0: encoder V-contraction ------------------
    @pl.when(p == 0)
    def _encoder():
        @pl.when(j == 0)
        def _init():
            h_acc[...] = jnp.zeros_like(h_acc)

        # (TB, TV) @ (TV, H) on the MXU in bf16, f32 accumulation.
        h_acc[...] += jnp.dot(x_ref[...].astype(jnp.bfloat16), w1t_ref[...],
                              preferred_element_type=jnp.float32)

        @pl.when(j == nv - 1)
        def _finalize_encoder():
            h = jnp.maximum(h_acc[...] + b1_ref[...], 0.0)   # bias + ReLU
            # Dropout(p=0.25) is identity in eval mode.
            t = jnp.dot(h, w2t_ref[...],
                        preferred_element_type=jnp.float32) + b2_ref[...]
            t = t * BN_EVAL_SCALE                            # BatchNorm1d eval
            # numerically stable softplus
            sp = jnp.maximum(t, 0.0) + jnp.log1p(jnp.exp(-jnp.abs(t)))
            alpha = jnp.maximum(sp, ALPHA_FLOOR)             # torch.max(1e-5, .)
            alpha_ref[...] = alpha

            # Dirichlet means of the two topic blocks.
            a_sem = alpha[:, :sem_topics]
            a_syn = alpha[:, sem_topics:]
            z_sem = a_sem / jnp.sum(a_sem, axis=-1, keepdims=True)
            z_syn = a_syn / jnp.sum(a_syn, axis=-1, keepdims=True)

            # Topic embeddings with the decoder BatchNorm eval scale folded in
            # (so no (2B, V) per-logit scaling pass is needed downstream).
            tsem[...] = jnp.dot(z_sem, wtsem_ref[...],
                                preferred_element_type=jnp.float32) * BN_EVAL_SCALE
            tsyn[...] = jnp.dot(z_syn, wtsyn_ref[...],
                                preferred_element_type=jnp.float32) * BN_EVAL_SCALE

            # Online softmax statistics.
            m_sem[...] = jnp.full_like(m_sem, NEG_INF)
            m_syn[...] = jnp.full_like(m_syn, NEG_INF)
            l_sem[...] = jnp.zeros_like(l_sem)
            l_syn[...] = jnp.zeros_like(l_syn)

    def _logits():
        we = we_ref[...]                                     # (E, TV) bf16
        lg_sem = jnp.dot(tsem[...].astype(jnp.bfloat16), we,
                         preferred_element_type=jnp.float32)
        lg_syn = jnp.dot(tsyn[...].astype(jnp.bfloat16), we,
                         preferred_element_type=jnp.float32)
        return lg_sem, lg_syn

    # --------------- phase 1: online softmax statistics -----------------
    @pl.when(p == 1)
    def _stats():
        lg_sem, lg_syn = _logits()
        mn = jnp.maximum(m_sem[...], jnp.max(lg_sem, axis=-1, keepdims=True))
        l_sem[...] = (l_sem[...] * jnp.exp(m_sem[...] - mn)
                      + jnp.sum(jnp.exp(lg_sem - mn), axis=-1, keepdims=True))
        m_sem[...] = mn
        mn2 = jnp.maximum(m_syn[...], jnp.max(lg_syn, axis=-1, keepdims=True))
        l_syn[...] = (l_syn[...] * jnp.exp(m_syn[...] - mn2)
                      + jnp.sum(jnp.exp(lg_syn - mn2), axis=-1, keepdims=True))
        m_syn[...] = mn2

    # --------------- phase 2: normalized probability writes -------------
    @pl.when(p == 2)
    def _write():
        lg_sem, lg_syn = _logits()
        # Exact reciprocal on only B values; the win vs a divide is removing
        # the per-element (2B, V) divide, and exactness keeps sum(probs)==1.
        inv_sem = pl.reciprocal(l_sem[...], approx=False)
        inv_syn = pl.reciprocal(l_syn[...], approx=False)
        rsem_ref[...] = jnp.exp(lg_sem - m_sem[...]) * inv_sem
        rsyn_ref[...] = jnp.exp(lg_syn - m_syn[...]) * inv_syn


def _pick_v_tile(V):
    # Prefer wide tiles (fewer grid steps, closer to HBM roofline).
    for t in (2048, 1024, 512, 256, 128):
        if V % t == 0:
            return t
    return V  # fallback: single full-extent block


# ----------------------------------------------------------------------------
# Wrapper: one fused pallas_call + (plain-JAX) Dirichlet KL.
#   batch_blocks: number of batch blocks on the leading "parallel" grid axis.
#     Use 2 on v7x to occupy both TensorCores; keep 1 on v5e/v6e (1 TC) so
#     weights are streamed only once.
# ----------------------------------------------------------------------------
def syconetm_forward(x, params, sem_topics, syn_topics, *,
                     v_tile=None, batch_blocks=1):
    B, V = x.shape
    H = params["enc_w1t"].shape[1]          # padded hidden (512)
    T = params["enc_w2t"].shape[1]          # sem_topics + syn_topics
    E = params["vocab_emb_t"].shape[0]      # embed dim (kept at 64, no 2x pad)
    assert T == sem_topics + syn_topics
    assert B % batch_blocks == 0
    TB = B // batch_blocks

    TV = v_tile if v_tile is not None else _pick_v_tile(V)
    assert V % TV == 0, "vocab size must be divisible by the V tile"
    NV = V // TV
    NB = batch_blocks

    kernel = functools.partial(syconetm_kernel, sem_topics=sem_topics)

    # Index maps.  Inputs not used in a phase are "parked" at a constant block
    # index so their DMA streams are elided for that phase.
    def x_map(b, p, j):
        return (b, jnp.where(p == 0, j, NV - 1))

    def w1t_map(b, p, j):
        return (jnp.where(p == 0, j, NV - 1), 0)

    def we_map(b, p, j):
        return (0, jnp.where(p == 0, 0, j))

    def const_map(b, p, j):
        return (0, 0)

    def alpha_map(b, p, j):
        return (b, 0)

    def recon_map(b, p, j):
        # Parked at tile 0 until phase 2 writes each tile exactly once.
        return (b, jnp.where(p == 2, j, 0))

    alpha, recon_sem, recon_syn = pl.pallas_call(
        kernel,
        out_shape=(
            jax.ShapeDtypeStruct((B, T), jnp.float32),
            jax.ShapeDtypeStruct((B, V), jnp.float32),
            jax.ShapeDtypeStruct((B, V), jnp.float32),
        ),
        grid_spec=pltpu.PrefetchScalarGridSpec(
            num_scalar_prefetch=0,
            grid=(NB, 3, NV),
            in_specs=[
                pl.BlockSpec((TB, TV), x_map),                    # x tile (f32)
                pl.BlockSpec((TV, H), w1t_map),                   # W1^T tile (bf16)
                pl.BlockSpec((1, H), const_map),                  # b1 (resident)
                pl.BlockSpec((H, T), const_map),                  # W2^T (resident)
                pl.BlockSpec((1, T), const_map),                  # b2 (resident)
                pl.BlockSpec((sem_topics, E), const_map),         # Wt_sem (resident)
                pl.BlockSpec((syn_topics, E), const_map),         # Wt_syn (resident)
                pl.BlockSpec((E, TV), we_map),                    # We^T tile (bf16)
            ],
            out_specs=[
                pl.BlockSpec((TB, T), alpha_map),                 # alpha
                pl.BlockSpec((TB, TV), recon_map),                # recon_sem
                pl.BlockSpec((TB, TV), recon_map),                # recon_syn
            ],
            scratch_shapes=[
                pltpu.VMEM((TB, H), jnp.float32),   # encoder h accumulator
                pltpu.VMEM((TB, E), jnp.float32),   # temb_sem (BN scale folded)
                pltpu.VMEM((TB, E), jnp.float32),   # temb_syn
                pltpu.VMEM((TB, 1), jnp.float32),   # m_sem (running max)
                pltpu.VMEM((TB, 1), jnp.float32),   # l_sem (running exp-sum)
                pltpu.VMEM((TB, 1), jnp.float32),   # m_syn
                pltpu.VMEM((TB, 1), jnp.float32),   # l_syn
            ],
        ),
        compiler_params=pltpu.CompilerParams(
            # batch axis parallel (both v7x TCs); phase + V axes sequential.
            dimension_semantics=("parallel", "arbitrary", "arbitrary"),
            # Few-MB working set after decoder tiling; 48 MiB is safe on all
            # generations (v7x physical VMEM is 64 MiB — do not raise further
            # there; v5e/v6e could go higher but do not need to).
            vmem_limit_bytes=48 * 1024 * 1024,
        ),
    )(x, params["enc_w1t"], params["enc_b1"], params["enc_w2t"],
      params["enc_b2"], params["dec_sem_wt"], params["dec_syn_wt"],
      params["vocab_emb_t"])

    kl_sem = dirichlet_kl_mean_const_prior(alpha[:, :sem_topics], 0.02)
    kl_syn = dirichlet_kl_mean_const_prior(alpha[:, sem_topics:], 0.02)
    return recon_sem, recon_syn, kl_sem, kl_syn


# ----------------------------------------------------------------------------
# KL(Dirichlet(alpha) || Dirichlet(beta_const)).mean() — plain JAX
# (lgamma / digamma have no Pallas TPU lowering).  Constant prior exploited
# analytically: no (B, T) prior arrays are materialized.
# ----------------------------------------------------------------------------
def dirichlet_kl_mean_const_prior(alpha, beta_val):
    K = alpha.shape[-1]
    a0 = jnp.sum(alpha, axis=-1)
    b0 = K * beta_val
    kl = (gammaln(a0) - gammaln(b0)
          - jnp.sum(gammaln(alpha), axis=-1)
          + K * gammaln(beta_val)
          + jnp.sum((alpha - beta_val)
                    * (digamma(alpha) - digamma(a0)[:, None]), axis=-1))
    return jnp.mean(kl)


# ----------------------------------------------------------------------------
# Parameter construction: logical PyTorch shapes, stored pre-transposed.
#   * hidden 500 -> 512 zero-padded (numerically identical).
#   * embed dim kept (rounded up to a multiple of 8 only if needed) — NOT
#     padded to 128: E is a contraction/sublane dim, padding only wastes HBM.
#   * The two large weights (W1^T, We^T) are stored bf16 for streaming.
# ----------------------------------------------------------------------------
def init_params(key, vocab_size, embed_dim, sem_topics, syn_topics,
                hidden=500, hidden_pad=512):
    T = sem_topics + syn_topics
    embed_pad = ((embed_dim + 7) // 8) * 8
    ks = jax.random.split(key, 5)

    def pad_to(a, shape):
        pads = [(0, s - d) for d, s in zip(a.shape, shape)]
        return jnp.pad(a, pads)

    # Encoder Linear 1: PyTorch W1 (500, V) -> kernel uses W1^T (V, 500) padded.
    w1t = (jax.random.normal(ks[0], (vocab_size, hidden)) * 0.02).astype(jnp.float32)
    enc_w1t = pad_to(w1t, (vocab_size, hidden_pad)).astype(jnp.bfloat16)
    enc_b1 = jnp.zeros((1, hidden_pad), jnp.float32)
    # Encoder Linear 2: PyTorch W2 (T, 500) -> kernel uses W2^T (500, T) padded.
    w2t = (jax.random.normal(ks[1], (hidden, T)) * 0.02).astype(jnp.float32)
    enc_w2t = pad_to(w2t, (hidden_pad, T))
    enc_b2 = jnp.zeros((1, T), jnp.float32)
    # Decoder topic_embeddings: PyTorch weight (E, K) -> kernel uses (K, E).
    wt_sem = (jax.random.normal(ks[2], (sem_topics, embed_dim)) * 0.02).astype(jnp.float32)
    wt_syn = (jax.random.normal(ks[3], (syn_topics, embed_dim)) * 0.02).astype(jnp.float32)
    dec_sem_wt = pad_to(wt_sem, (sem_topics, embed_pad))
    dec_syn_wt = pad_to(wt_syn, (syn_topics, embed_pad))
    # Shared vocab embeddings: PyTorch We (V, E) -> kernel uses We^T (E, V) bf16.
    vocab_emb = (jax.random.normal(ks[4], (vocab_size, embed_dim)) * 0.1).astype(jnp.float32)
    vocab_emb_t = pad_to(vocab_emb.T, (embed_pad, vocab_size)).astype(jnp.bfloat16)
    return {
        "enc_w1t": enc_w1t, "enc_b1": enc_b1,
        "enc_w2t": enc_w2t, "enc_b2": enc_b2,
        "dec_sem_wt": dec_sem_wt, "dec_syn_wt": dec_syn_wt,
        "vocab_emb_t": vocab_emb_t,
    }


# Pure-JAX reference (same stored params, weights upcast to f32) for sanity.
def reference_forward(x, params, sem_topics):
    w1t = params["enc_w1t"].astype(jnp.float32)
    we = params["vocab_emb_t"].astype(jnp.float32)
    h = jnp.maximum(x @ w1t + params["enc_b1"], 0.0)
    t = (h @ params["enc_w2t"] + params["enc_b2"]) * BN_EVAL_SCALE
    alpha = jnp.maximum(jax.nn.softplus(t), ALPHA_FLOOR)
    a_sem, a_syn = alpha[:, :sem_topics], alpha[:, sem_topics:]
    z_sem = a_sem / a_sem.sum(-1, keepdims=True)
    z_syn = a_syn / a_syn.sum(-1, keepdims=True)
    lg_sem = (z_sem @ params["dec_sem_wt"]) @ we * BN_EVAL_SCALE
    lg_syn = (z_syn @ params["dec_syn_wt"]) @ we * BN_EVAL_SCALE
    return jax.nn.softmax(lg_sem, axis=-1), jax.nn.softmax(lg_syn, axis=-1)


if __name__ == "__main__":
    B = 16            # MXU M-dim benefits from larger batch; kernel supports it
    vocab_size = 256
    embed_dim = 64
    sem_topics = 12
    syn_topics = 20

    key = jax.random.PRNGKey(0)
    kx, kp = jax.random.split(key)
    # Bag-of-words-like non-negative input counts.
    x = jax.random.uniform(kx, (B, vocab_size), jnp.float32, 0.0, 5.0)
    params = init_params(kp, vocab_size, embed_dim, sem_topics, syn_topics)

    # v_tile=128 -> 2 V-tiles: exercises the encoder reduction, the online
    # softmax stats pass and the tiled decoder write pass.
    fwd = jax.jit(functools.partial(
        syconetm_forward, sem_topics=sem_topics, syn_topics=syn_topics,
        v_tile=128, batch_blocks=1))
    recon_sem, recon_syn, kl_sem, kl_syn = fwd(x, params)
    jax.block_until_ready((recon_sem, recon_syn, kl_sem, kl_syn))

    # Sanity checks: softmax distributions over vocab, finite KL, matches ref.
    assert recon_sem.shape == (B, vocab_size)
    assert recon_syn.shape == (B, vocab_size)
    assert bool(jnp.allclose(jnp.sum(recon_sem, axis=-1), 1.0, atol=1e-4))
    assert bool(jnp.allclose(jnp.sum(recon_syn, axis=-1), 1.0, atol=1e-4))
    assert bool(jnp.isfinite(kl_sem)) and bool(jnp.isfinite(kl_syn))
    ref_sem, ref_syn = reference_forward(x, params, sem_topics)
    assert bool(jnp.allclose(recon_sem, ref_sem, atol=2e-3))
    assert bool(jnp.allclose(recon_syn, ref_syn, atol=2e-3))

    # Batch-parallel variant (leading "parallel" axis of 2 -> both v7x TCs);
    # must match the single-block result.
    fwd2 = jax.jit(functools.partial(
        syconetm_forward, sem_topics=sem_topics, syn_topics=syn_topics,
        v_tile=128, batch_blocks=2))
    r2_sem, r2_syn, k2_sem, k2_syn = fwd2(x, params)
    jax.block_until_ready((r2_sem, r2_syn, k2_sem, k2_syn))
    assert bool(jnp.allclose(r2_sem, recon_sem, atol=1e-4))
    assert bool(jnp.allclose(r2_syn, recon_syn, atol=1e-4))
    assert bool(jnp.isfinite(k2_sem)) and bool(jnp.isfinite(k2_syn))

    print("KERNEL_OK")
</pallas_src>

<mosaic_0001>
module attributes {stable_mosaic.version = 11 : i64} {
  func.func @syconetm_kernel(%arg0: i32, %arg1: i32, %arg2: i32, %arg3: memref<16x128xf32, #tpu.memory_space<vmem>>, %arg4: memref<128x512xbf16, #tpu.memory_space<vmem>>, %arg5: memref<1x512xf32, #tpu.memory_space<vmem>>, %arg6: memref<512x32xf32, #tpu.memory_space<vmem>>, %arg7: memref<1x32xf32, #tpu.memory_space<vmem>>, %arg8: memref<12x64xf32, #tpu.memory_space<vmem>>, %arg9: memref<20x64xf32, #tpu.memory_space<vmem>>, %arg10: memref<64x128xbf16, #tpu.memory_space<vmem>>, %arg11: memref<16x32xf32, #tpu.memory_space<vmem>>, %arg12: memref<16x128xf32, #tpu.memory_space<vmem>>, %arg13: memref<16x128xf32, #tpu.memory_space<vmem>>, %arg14: memref<16x512xf32, #tpu.memory_space<vmem>>, %arg15: memref<16x64xf32, #tpu.memory_space<vmem>>, %arg16: memref<16x64xf32, #tpu.memory_space<vmem>>, %arg17: memref<16x1xf32, #tpu.memory_space<vmem>>, %arg18: memref<16x1xf32, #tpu.memory_space<vmem>>, %arg19: memref<16x1xf32, #tpu.memory_space<vmem>>, %arg20: memref<16x1xf32, #tpu.memory_space<vmem>>) attributes {dimension_semantics = [#tpu.dimension_semantics<parallel>, #tpu.dimension_semantics<arbitrary>, #tpu.dimension_semantics<arbitrary>], iteration_bounds = array<i64: 1, 3, 2>, scalar_prefetch = 0 : i64, scratch_operands = 7 : i64, tpu.core_type = #tpu.core_type<tc>, window_params = [{transform_indices = @transform_0, window_bounds = array<i64: 16, 128>}, {transform_indices = @transform_1, window_bounds = array<i64: 128, 512>}, {pipeline_mode = #tpu.pipeline_mode<synchronous>, transform_indices = @transform_2, window_bounds = array<i64: 1, 512>}, {pipeline_mode = #tpu.pipeline_mode<synchronous>, transform_indices = @transform_3, window_bounds = array<i64: 512, 32>}, {pipeline_mode = #tpu.pipeline_mode<synchronous>, transform_indices = @transform_4, window_bounds = array<i64: 1, 32>}, {pipeline_mode = #tpu.pipeline_mode<synchronous>, transform_indices = @transform_5, window_bounds = array<i64: 12, 64>}, {pipeline_mode = #tpu.pipeline_mode<synchronous>, transform_indices = @transform_6, window_bounds = array<i64: 20, 64>}, {transform_indices = @transform_7, window_bounds = array<i64: 64, 128>}, {transform_indices = @transform_8, window_bounds = array<i64: 16, 32>}, {transform_indices = @transform_9, window_bounds = array<i64: 16, 128>}, {transform_indices = @transform_10, window_bounds = array<i64: 16, 128>}]} {
    %c0_i32 = arith.constant 0 : i32
    %0 = arith.cmpi eq, %arg1, %c0_i32 : i32
    %1 = arith.extui %0 : i1 to i32
    %c0_i32_0 = arith.constant 0 : i32
    %2 = arith.cmpi ne, %1, %c0_i32_0 : i32
    scf.if %2 {
      %c0_i32_3 = arith.constant 0 : i32
      %9 = arith.cmpi eq, %arg2, %c0_i32_3 : i32
      %10 = arith.extui %9 : i1 to i32
      %c0_i32_4 = arith.constant 0 : i32
      %11 = arith.cmpi ne, %10, %c0_i32_4 : i32
      scf.if %11 {
        %cst_14 = arith.constant 0.000000e+00 : f32
        %22 = vector.broadcast %cst_14 : f32 to vector<16x512xf32>
        %c0_15 = arith.constant 0 : index
        %c0_16 = arith.constant 0 : index
        %23 = vector.load %arg14[%c0_15, %c0_16] : memref<16x512xf32, #tpu.memory_space<vmem>>, vector<16x512xf32>
        tpu.vector_store %arg14[%c0_15, %c0_16], %22 {strides = array<i32>} : memref<16x512xf32, #tpu.memory_space<vmem>>, vector<16x512xf32>,
      } else {
      }
      %c0 = arith.constant 0 : index
      %c0_5 = arith.constant 0 : index
      %12 = vector.load %arg14[%c0, %c0_5] : memref<16x512xf32, #tpu.memory_space<vmem>>, vector<16x512xf32>
      %c0_6 = arith.constant 0 : index
      %c0_7 = arith.constant 0 : index
      %13 = vector.load %arg3[%c0_6, %c0_7] : memref<16x128xf32, #tpu.memory_space<vmem>>, vector<16x128xf32>
      %14 = arith.truncf %13 : vector<16x128xf32> to vector<16x128xbf16>
      %c0_8 = arith.constant 0 : index
      %c0_9 = arith.constant 0 : index
      %15 = vector.load %arg4[%c0_8, %c0_9] : memref<128x512xbf16, #tpu.memory_space<vmem>>, vector<128x512xbf16>
      %cst = arith.constant dense<0.000000e+00> : vector<16x512xf32>
      %16 = tpu.matmul %14, %15, %cst {dimension_numbers = #tpu.dot_dimension_numbers<[1], [0], [0], [1], [0, 0, 1, 1], [], []>} : vector<16x128xbf16>, vector<128x512xbf16>, vector<16x512xf32> -> vector<16x512xf32>
      %17 = arith.addf %12, %16 : vector<16x512xf32>
      %c0_10 = arith.constant 0 : index
      %c0_11 = arith.constant 0 : index
      %18 = vector.load %arg14[%c0_10, %c0_11] : memref<16x512xf32, #tpu.memory_space<vmem>>, vector<16x512xf32>
      tpu.vector_store %arg14[%c0_10, %c0_11], %17 {strides = array<i32>} : memref<16x512xf32, #tpu.memory_space<vmem>>, vector<16x512xf32>,
      %c1_i32_12 = arith.constant 1 : i32
      %19 = arith.cmpi eq, %arg2, %c1_i32_12 : i32
      %20 = arith.extui %19 : i1 to i32
      %c0_i32_13 = arith.constant 0 : i32
      %21 = arith.cmpi ne, %20, %c0_i32_13 : i32
      scf.if %21 {
        %c0_14 = arith.constant 0 : index
        %c0_15 = arith.constant 0 : index
        %22 = vector.load %arg14[%c0_14, %c0_15] : memref<16x512xf32, #tpu.memory_space<vmem>>, vector<16x512xf32>
        %c0_16 = arith.constant 0 : index
        %c0_17 = arith.constant 0 : index
        %23 = vector.load %arg5[%c0_16, %c0_17] : memref<1x512xf32, #tpu.memory_space<vmem>>, vector<1x512xf32>
        %24 = vector.broadcast %23 : vector<1x512xf32> to vector<16x512xf32>
        %25 = arith.addf %22, %24 : vector<16x512xf32>
        %cst_18 = arith.constant 0.000000e+00 : f32
        %26 = vector.broadcast %cst_18 : f32 to vector<16x512xf32>
        %27 = arith.maximumf %25, %26 : vector<16x512xf32>
        %c0_19 = arith.constant 0 : index
        %c0_20 = arith.constant 0 : index
        %28 = vector.load %arg6[%c0_19, %c0_20] : memref<512x32xf32, #tpu.memory_space<vmem>>, vector<512x32xf32>
        %cst_21 = arith.constant dense<0.000000e+00> : vector<16x32xf32>
        %29 = tpu.matmul %27, %28, %cst_21 {dimension_numbers = #tpu.dot_dimension_numbers<[1], [0], [0], [1], [0, 0, 1, 1], [], []>} : vector<16x512xf32>, vector<512x32xf32>, vector<16x32xf32> -> vector<16x32xf32>
        %c0_22 = arith.constant 0 : index
        %c0_23 = arith.constant 0 : index
        %30 = vector.load %arg7[%c0_22, %c0_23] : memref<1x32xf32, #tpu.memory_space<vmem>>, vector<1x32xf32>
        %31 = vector.broadcast %30 : vector<1x32xf32> to vector<16x32xf32>
        %32 = arith.addf %29, %31 : vector<16x32xf32>
        %cst_24 = arith.constant 0.999994993 : f32
        %33 = vector.broadcast %cst_24 : f32 to vector<16x32xf32>
        %34 = arith.mulf %32, %33 : vector<16x32xf32>
        %cst_25 = arith.constant 0.000000e+00 : f32
        %35 = vector.broadcast %cst_25 : f32 to vector<16x32xf32>
        %36 = arith.maximumf %34, %35 : vector<16x32xf32>
        %37 = math.absf %34 : vector<16x32xf32>
        %cst_26 = arith.constant 0.000000e+00 : f32
        %38 = vector.broadcast %cst_26 : f32 to vector<16x32xf32>
        %39 = arith.subf %38, %37 : vector<16x32xf32>
        %40 = math.exp %39 : vector<16x32xf32>
        %41 = math.log1p %40 : vector<16x32xf32>
        %42 = arith.addf %36, %41 : vector<16x32xf32>
        %cst_27 = arith.constant 9.99999974E-6 : f32
        %43 = vector.broadcast %cst_27 : f32 to vector<16x32xf32>
        %44 = arith.maximumf %42, %43 : vector<16x32xf32>
        %c0_28 = arith.constant 0 : index
        %c0_29 = arith.constant 0 : index
        %45 = vector.load %arg11[%c0_28, %c0_29] : memref<16x32xf32, #tpu.memory_space<vmem>>, vector<16x32xf32>
        tpu.vector_store %arg11[%c0_28, %c0_29], %44 {strides = array<i32>} : memref<16x32xf32, #tpu.memory_space<vmem>>, vector<16x32xf32>,
        %46 = vector.extract_strided_slice %44 {offsets = [0, 0], sizes = [16, 12], strides = [1, 1]} : vector<16x32xf32> to vector<16x12xf32>
        %47 = vector.extract_strided_slice %44 {offsets = [0, 12], sizes = [16, 20], strides = [1, 1]} : vector<16x32xf32> to vector<16x20xf32>
        %cst_30 = arith.constant dense<0.000000e+00> : vector<16xf32>
        %48 = vector.multi_reduction <add>, %46, %cst_30 [1] : vector<16x12xf32> to vector<16xf32>
        %49 = vector.shape_cast %48 : vector<16xf32> to vector<16x1xf32>
        %50 = vector.broadcast %49 : vector<16x1xf32> to vector<16x12xf32>
        %51 = arith.divf %46, %50 : vector<16x12xf32>
        %cst_31 = arith.constant dense<0.000000e+00> : vector<16xf32>
        %52 = vector.multi_reduction <add>, %47, %cst_31 [1] : vector<16x20xf32> to vector<16xf32>
        %53 = vector.shape_cast %52 : vector<16xf32> to vector<16x1xf32>
        %54 = vector.broadcast %53 : vector<16x1xf32> to vector<16x20xf32>
        %55 = arith.divf %47, %54 : vector<16x20xf32>
        %c0_32 = arith.constant 0 : index
        %c0_33 = arith.constant 0 : index
        %56 = vector.load %arg8[%c0_32, %c0_33] : memref<12x64xf32, #tpu.memory_space<vmem>>, vector<12x64xf32>
        %cst_34 = arith.constant dense<0.000000e+00> : vector<16x64xf32>
        %57 = tpu.matmul %51, %56, %cst_34 {dimension_numbers = #tpu.dot_dimension_numbers<[1], [0], [0], [1], [0, 0, 1, 1], [], []>} : vector<16x12xf32>, vector<12x64xf32>, vector<16x64xf32> -> vector<16x64xf32>
        %cst_35 = arith.constant 0.999994993 : f32
        %58 = vector.broadcast %cst_35 : f32 to vector<16x64xf32>
        %59 = arith.mulf %57, %58 : vector<16x64xf32>
        %c0_36 = arith.constant 0 : index
        %c0_37 = arith.constant 0 : index
        %60 = vector.load %arg15[%c0_36, %c0_37] : memref<16x64xf32, #tpu.memory_space<vmem>>, vector<16x64xf32>
        tpu.vector_store %arg15[%c0_36, %c0_37], %59 {strides = array<i32>} : memref<16x64xf32, #tpu.memory_space<vmem>>, vector<16x64xf32>,
        %c0_38 = arith.constant 0 : index
        %c0_39 = arith.constant 0 : index
        %61 = vector.load %arg9[%c0_38, %c0_39] : memref<20x64xf32, #tpu.memory_space<vmem>>, vector<20x64xf32>
        %cst_40 = arith.constant dense<0.000000e+00> : vector<16x64xf32>
        %62 = tpu.matmul %55, %61, %cst_40 {dimension_numbers = #tpu.dot_dimension_numbers<[1], [0], [0], [1], [0, 0, 1, 1], [], []>} : vector<16x20xf32>, vector<20x64xf32>, vector<16x64xf32> -> vector<16x64xf32>
        %cst_41 = arith.constant 0.999994993 : f32
        %63 = vector.broadcast %cst_41 : f32 to vector<16x64xf32>
        %64 = arith.mulf %62, %63 : vector<16x64xf32>
        %c0_42 = arith.constant 0 : index
        %c0_43 = arith.constant 0 : index
        %65 = vector.load %arg16[%c0_42, %c0_43] : memref<16x64xf32, #tpu.memory_space<vmem>>, vector<16x64xf32>
        tpu.vector_store %arg16[%c0_42, %c0_43], %64 {strides = array<i32>} : memref<16x64xf32, #tpu.memory_space<vmem>>, vector<16x64xf32>,
        %cst_44 = arith.constant 0xFF800000 : f32
        %66 = vector.broadcast %cst_44 : f32 to vector<16x1xf32>
        %c0_45 = arith.constant 0 : index
        %c0_46 = arith.constant 0 : index
        %67 = vector.load %arg17[%c0_45, %c0_46] : memref<16x1xf32, #tpu.memory_space<vmem>>, vector<16x1xf32>
        tpu.vector_store %arg17[%c0_45, %c0_46], %66 {strides = array<i32>} : memref<16x1xf32, #tpu.memory_space<vmem>>, vector<16x1xf32>,
        %cst_47 = arith.constant 0xFF800000 : f32
        %68 = vector.broadcast %cst_47 : f32 to vector<16x1xf32>
        %c0_48 = arith.constant 0 : index
        %c0_49 = arith.constant 0 : index
        %69 = vector.load %arg19[%c0_48, %c0_49] : memref<16x1xf32, #tpu.memory_space<vmem>>, vector<16x1xf32>
        tpu.vector_store %arg19[%c0_48, %c0_49], %68 {strides = array<i32>} : memref<16x1xf32, #tpu.memory_space<vmem>>, vector<16x1xf32>,
        %cst_50 = arith.constant 0.000000e+00 : f32
        %70 = vector.broadcast %cst_50 : f32 to vector<16x1xf32>
        %c0_51 = arith.constant 0 : index
        %c0_52 = arith.constant 0 : index
        %71 = vector.load %arg18[%c0_51, %c0_52] : memref<16x1xf32, #tpu.memory_space<vmem>>, vector<16x1xf32>
        tpu.vector_store %arg18[%c0_51, %c0_52], %70 {strides = array<i32>} : memref<16x1xf32, #tpu.memory_space<vmem>>, vector<16x1xf32>,
        %cst_53 = arith.constant 0.000000e+00 : f32
        %72 = vector.broadcast %cst_53 : f32 to vector<16x1xf32>
        %c0_54 = arith.constant 0 : index
        %c0_55 = arith.constant 0 : index
        %73 = vector.load %arg20[%c0_54, %c0_55] : memref<16x1xf32, #tpu.memory_space<vmem>>, vector<16x1xf32>
        tpu.vector_store %arg20[%c0_54, %c0_55], %72 {strides = array<i32>} : memref<16x1xf32, #tpu.memory_space<vmem>>, vector<16x1xf32>,
      } else {
      }
    } else {
    }
    %c1_i32 = arith.constant 1 : i32
    %3 = arith.cmpi eq, %arg1, %c1_i32 : i32
    %4 = arith.extui %3 : i1 to i32
    %c0_i32_1 = arith.constant 0 : i32
    %5 = arith.cmpi ne, %4, %c0_i32_1 : i32
    scf.if %5 {
      %c0 = arith.constant 0 : index
      %c0_3 = arith.constant 0 : index
      %9 = vector.load %arg10[%c0, %c0_3] : memref<64x128xbf16, #tpu.memory_space<vmem>>, vector<64x128xbf16>
      %c0_4 = arith.constant 0 : index
      %c0_5 = arith.constant 0 : index
      %10 = vector.load %arg15[%c0_4, %c0_5] : memref<16x64xf32, #tpu.memory_space<vmem>>, vector<16x64xf32>
      %11 = arith.truncf %10 : vector<16x64xf32> to vector<16x64xbf16>
      %cst = arith.constant dense<0.000000e+00> : vector<16x128xf32>
      %12 = tpu.matmul %11, %9, %cst {dimension_numbers = #tpu.dot_dimension_numbers<[1], [0], [0], [1], [0, 0, 1, 1], [], []>} : vector<16x64xbf16>, vector<64x128xbf16>, vector<16x128xf32> -> vector<16x128xf32>
      %c0_6 = arith.constant 0 : index
      %c0_7 = arith.constant 0 : index
      %13 = vector.load %arg16[%c0_6, %c0_7] : memref<16x64xf32, #tpu.memory_space<vmem>>, vector<16x64xf32>
      %14 = arith.truncf %13 : vector<16x64xf32> to vector<16x64xbf16>
      %cst_8 = arith.constant dense<0.000000e+00> : vector<16x128xf32>
      %15 = tpu.matmul %14, %9, %cst_8 {dimension_numbers = #tpu.dot_dimension_numbers<[1], [0], [0], [1], [0, 0, 1, 1], [], []>} : vector<16x64xbf16>, vector<64x128xbf16>, vector<16x128xf32> -> vector<16x128xf32>
      %c0_9 = arith.constant 0 : index
      %c0_10 = arith.constant 0 : index
      %16 = vector.load %arg17[%c0_9, %c0_10] : memref<16x1xf32, #tpu.memory_space<vmem>>, vector<16x1xf32>
      %cst_11 = arith.constant dense<0xFF800000> : vector<16xf32>
      %17 = vector.multi_reduction <maximumf>, %12, %cst_11 [1] : vector<16x128xf32> to vector<16xf32>
      %18 = vector.shape_cast %17 : vector<16xf32> to vector<16x1xf32>
      %19 = arith.maximumf %16, %18 : vector<16x1xf32>
      %c0_12 = arith.constant 0 : index
      %c0_13 = arith.constant 0 : index
      %20 = vector.load %arg18[%c0_12, %c0_13] : memref<16x1xf32, #tpu.memory_space<vmem>>, vector<16x1xf32>
      %c0_14 = arith.constant 0 : index
      %c0_15 = arith.constant 0 : index
      %21 = vector.load %arg17[%c0_14, %c0_15] : memref<16x1xf32, #tpu.memory_space<vmem>>, vector<16x1xf32>
      %22 = arith.subf %21, %19 : vector<16x1xf32>
      %23 = math.exp %22 : vector<16x1xf32>
      %24 = arith.mulf %20, %23 : vector<16x1xf32>
      %25 = vector.broadcast %19 : vector<16x1xf32> to vector<16x128xf32>
      %26 = arith.subf %12, %25 : vector<16x128xf32>
      %27 = math.exp %26 : vector<16x128xf32>
      %cst_16 = arith.constant dense<0.000000e+00> : vector<16xf32>
      %28 = vector.multi_reduction <add>, %27, %cst_16 [1] : vector<16x128xf32> to vector<16xf32>
      %29 = vector.shape_cast %28 : vector<16xf32> to vector<16x1xf32>
      %30 = arith.addf %24, %29 : vector<16x1xf32>
      %c0_17 = arith.constant 0 : index
      %c0_18 = arith.constant 0 : index
      %31 = vector.load %arg18[%c0_17, %c0_18] : memref<16x1xf32, #tpu.memory_space<vmem>>, vector<16x1xf32>
      tpu.vector_store %arg18[%c0_17, %c0_18], %30 {strides = array<i32>} : memref<16x1xf32, #tpu.memory_space<vmem>>, vector<16x1xf32>,
      %c0_19 = arith.constant 0 : index
      %c0_20 = arith.constant 0 : index
      %32 = vector.load %arg17[%c0_19, %c0_20] : memref<16x1xf32, #tpu.memory_space<vmem>>, vector<16x1xf32>
      tpu.vector_store %arg17[%c0_19, %c0_20], %19 {strides = array<i32>} : memref<16x1xf32, #tpu.memory_space<vmem>>, vector<16x1xf32>,
      %c0_21 = arith.constant 0 : index
      %c0_22 = arith.constant 0 : index
      %33 = vector.load %arg19[%c0_21, %c0_22] : memref<16x1xf32, #tpu.memory_space<vmem>>, vector<16x1xf32>
      %cst_23 = arith.constant dense<0xFF800000> : vector<16xf32>
      %34 = vector.multi_reduction <maximumf>, %15, %cst_23 [1] : vector<16x128xf32> to vector<16xf32>
      %35 = vector.shape_cast %34 : vector<16xf32> to vector<16x1xf32>
      %36 = arith.maximumf %33, %35 : vector<16x1xf32>
      %c0_24 = arith.constant 0 : index
      %c0_25 = arith.constant 0 : index
      %37 = vector.load %arg20[%c0_24, %c0_25] : memref<16x1xf32, #tpu.memory_space<vmem>>, vector<16x1xf32>
      %c0_26 = arith.constant 0 : index
      %c0_27 = arith.constant 0 : index
      %38 = vector.load %arg19[%c0_26, %c0_27] : memref<16x1xf32, #tpu.memory_space<vmem>>, vector<16x1xf32>
      %39 = arith.subf %38, %36 : vector<16x1xf32>
      %40 = math.exp %39 : vector<16x1xf32>
      %41 = arith.mulf %37, %40 : vector<16x1xf32>
      %42 = vector.broadcast %36 : vector<16x1xf32> to vector<16x128xf32>
      %43 = arith.subf %15, %42 : vector<16x128xf32>
      %44 = math.exp %43 : vector<16x128xf32>
      %cst_28 = arith.constant dense<0.000000e+00> : vector<16xf32>
      %45 = vector.multi_reduction <add>, %44, %cst_28 [1] : vector<16x128xf32> to vector<16xf32>
      %46 = vector.shape_cast %45 : vector<16xf32> to vector<16x1xf32>
      %47 = arith.addf %41, %46 : vector<16x1xf32>
      %c0_29 = arith.constant 0 : index
      %c0_30 = arith.constant 0 : index
      %48 = vector.load %arg20[%c0_29, %c0_30] : memref<16x1xf32, #tpu.memory_space<vmem>>, vector<16x1xf32>
      tpu.vector_store %arg20[%c0_29, %c0_30], %47 {strides = array<i32>} : memref<16x1xf32, #tpu.memory_space<vmem>>, vector<16x1xf32>,
      %c0_31 = arith.constant 0 : index
      %c0_32 = arith.constant 0 : index
      %49 = vector.load %arg19[%c0_31, %c0_32] : memref<16x1xf32, #tpu.memory_space<vmem>>, vector<16x1xf32>
      tpu.vector_store %arg19[%c0_31, %c0_32], %36 {strides = array<i32>} : memref<16x1xf32, #tpu.memory_space<vmem>>, vector<16x1xf32>,
    } else {
    }
    %c2_i32 = arith.constant 2 : i32
    %6 = arith.cmpi eq, %arg1, %c2_i32 : i32
    %7 = arith.extui %6 : i1 to i32
    %c0_i32_2 = arith.constant 0 : i32
    %8 = arith.cmpi ne, %7, %c0_i32_2 : i32
    scf.if %8 {
      %c0 = arith.constant 0 : index
      %c0_3 = arith.constant 0 : index
      %9 = vector.load %arg10[%c0, %c0_3] : memref<64x128xbf16, #tpu.memory_space<vmem>>, vector<64x128xbf16>
      %c0_4 = arith.constant 0 : index
      %c0_5 = arith.constant 0 : index
      %10 = vector.load %arg15[%c0_4, %c0_5] : memref<16x64xf32, #tpu.memory_space<vmem>>, vector<16x64xf32>
      %11 = arith.truncf %10 : vector<16x64xf32> to vector<16x64xbf16>
      %cst = arith.constant dense<0.000000e+00> : vector<16x128xf32>
      %12 = tpu.matmul %11, %9, %cst {dimension_numbers = #tpu.dot_dimension_numbers<[1], [0], [0], [1], [0, 0, 1, 1], [], []>} : vector<16x64xbf16>, vector<64x128xbf16>, vector<16x128xf32> -> vector<16x128xf32>
      %c0_6 = arith.constant 0 : index
      %c0_7 = arith.constant 0 : index
      %13 = vector.load %arg16[%c0_6, %c0_7] : memref<16x64xf32, #tpu.memory_space<vmem>>, vector<16x64xf32>
      %14 = arith.truncf %13 : vector<16x64xf32> to vector<16x64xbf16>
      %cst_8 = arith.constant dense<0.000000e+00> : vector<16x128xf32>
      %15 = tpu.matmul %14, %9, %cst_8 {dimension_numbers = #tpu.dot_dimension_numbers<[1], [0], [0], [1], [0, 0, 1, 1], [], []>} : vector<16x64xbf16>, vector<64x128xbf16>, vector<16x128xf32> -> vector<16x128xf32>
      %c0_9 = arith.constant 0 : index
      %c0_10 = arith.constant 0 : index
      %16 = vector.load %arg18[%c0_9, %c0_10] : memref<16x1xf32, #tpu.memory_space<vmem>>, vector<16x1xf32>
      %17 = tpu.reciprocal %16 : vector<16x1xf32> -> vector<16x1xf32>
      %c0_11 = arith.constant 0 : index
      %c0_12 = arith.constant 0 : index
      %18 = vector.load %arg20[%c0_11, %c0_12] : memref<16x1xf32, #tpu.memory_space<vmem>>, vector<16x1xf32>
      %19 = tpu.reciprocal %18 : vector<16x1xf32> -> vector<16x1xf32>
      %c0_13 = arith.constant 0 : index
      %c0_14 = arith.constant 0 : index
      %20 = vector.load %arg17[%c0_13, %c0_14] : memref<16x1xf32, #tpu.memory_space<vmem>>, vector<16x1xf32>
      %21 = vector.broadcast %20 : vector<16x1xf32> to vector<16x128xf32>
      %22 = arith.subf %12, %21 : vector<16x128xf32>
      %23 = math.exp %22 : vector<16x128xf32>
      %24 = vector.broadcast %17 : vector<16x1xf32> to vector<16x128xf32>
      %25 = arith.mulf %23, %24 : vector<16x128xf32>
      %c0_15 = arith.constant 0 : index
      %c0_16 = arith.constant 0 : index
      %26 = vector.load %arg12[%c0_15, %c0_16] : memref<16x128xf32, #tpu.memory_space<vmem>>, vector<16x128xf32>
      tpu.vector_store %arg12[%c0_15, %c0_16], %25 {strides = array<i32>} : memref<16x128xf32, #tpu.memory_space<vmem>>, vector<16x128xf32>,
      %c0_17 = arith.constant 0 : index
      %c0_18 = arith.constant 0 : index
      %27 = vector.load %arg19[%c0_17, %c0_18] : memref<16x1xf32, #tpu.memory_space<vmem>>, vector<16x1xf32>
      %28 = vector.broadcast %27 : vector<16x1xf32> to vector<16x128xf32>
      %29 = arith.subf %15, %28 : vector<16x128xf32>
      %30 = math.exp %29 : vector<16x128xf32>
      %31 = vector.broadcast %19 : vector<16x1xf32> to vector<16x128xf32>
      %32 = arith.mulf %30, %31 : vector<16x128xf32>
      %c0_19 = arith.constant 0 : index
      %c0_20 = arith.constant 0 : index
      %33 = vector.load %arg13[%c0_19, %c0_20] : memref<16x128xf32, #tpu.memory_space<vmem>>, vector<16x128xf32>
      tpu.vector_store %arg13[%c0_19, %c0_20], %32 {strides = array<i32>} : memref<16x128xf32, #tpu.memory_space<vmem>>, vector<16x128xf32>,
    } else {
    }
    return
  }
  func.func @transform_0(%arg0: i32, %arg1: i32, %arg2: i32) -> (i32, i32) {
    %c0_i32 = arith.constant 0 : i32
    %0 = arith.cmpi eq, %arg1, %c0_i32 : i32
    %c1_i32 = arith.constant 1 : i32
    %1 = arith.select %0, %arg2, %c1_i32 : i32
    %c0_i32_0 = arith.constant 0 : i32
    return %arg0, %1 : i32, i32
  }
  func.func @transform_1(%arg0: i32, %arg1: i32, %arg2: i32) -> (i32, i32) {
    %c0_i32 = arith.constant 0 : i32
    %0 = arith.cmpi eq, %arg1, %c0_i32 : i32
    %c1_i32 = arith.constant 1 : i32
    %1 = arith.select %0, %arg2, %c1_i32 : i32
    %c0_i32_0 = arith.constant 0 : i32
    %c0_i32_1 = arith.constant 0 : i32
    return %1, %c0_i32_0 : i32, i32
  }
  func.func @transform_2(%arg0: i32, %arg1: i32, %arg2: i32) -> (i32, i32) {
    %c0_i32 = arith.constant 0 : i32
    %c0_i32_0 = arith.constant 0 : i32
    %c0_i32_1 = arith.constant 0 : i32
    return %c0_i32, %c0_i32_0 : i32, i32
  }
  func.func @transform_3(%arg0: i32, %arg1: i32, %arg2: i32) -> (i32, i32) {
    %c0_i32 = arith.constant 0 : i32
    %c0_i32_0 = arith.constant 0 : i32
    %c0_i32_1 = arith.constant 0 : i32
    return %c0_i32, %c0_i32_0 : i32, i32
  }
  func.func @transform_4(%arg0: i32, %arg1: i32, %arg2: i32) -> (i32, i32) {
    %c0_i32 = arith.constant 0 : i32
    %c0_i32_0 = arith.constant 0 : i32
    %c0_i32_1 = arith.constant 0 : i32
    return %c0_i32, %c0_i32_0 : i32, i32
  }
  func.func @transform_5(%arg0: i32, %arg1: i32, %arg2: i32) -> (i32, i32) {
    %c0_i32 = arith.constant 0 : i32
    %c0_i32_0 = arith.constant 0 : i32
    %c0_i32_1 = arith.constant 0 : i32
    return %c0_i32, %c0_i32_0 : i32, i32
  }
  func.func @transform_6(%arg0: i32, %arg1: i32, %arg2: i32) -> (i32, i32) {
    %c0_i32 = arith.constant 0 : i32
    %c0_i32_0 = arith.constant 0 : i32
    %c0_i32_1 = arith.constant 0 : i32
    return %c0_i32, %c0_i32_0 : i32, i32
  }
  func.func @transform_7(%arg0: i32, %arg1: i32, %arg2: i32) -> (i32, i32) {
    %c0_i32 = arith.constant 0 : i32
    %0 = arith.cmpi eq, %arg1, %c0_i32 : i32
    %c0_i32_0 = arith.constant 0 : i32
    %1 = arith.select %0, %c0_i32_0, %arg2 : i32
    %c0_i32_1 = arith.constant 0 : i32
    %c0_i32_2 = arith.constant 0 : i32
    return %c0_i32_1, %1 : i32, i32
  }
  func.func @transform_8(%arg0: i32, %arg1: i32, %arg2: i32) -> (i32, i32) {
    %c0_i32 = arith.constant 0 : i32
    %c0_i32_0 = arith.constant 0 : i32
    return %arg0, %c0_i32 : i32, i32
  }
  func.func @transform_9(%arg0: i32, %arg1: i32, %arg2: i32) -> (i32, i32) {
    %c2_i32 = arith.constant 2 : i32
    %0 = arith.cmpi eq, %arg1, %c2_i32 : i32
    %c0_i32 = arith.constant 0 : i32
    %1 = arith.select %0, %arg2, %c0_i32 : i32
    %c0_i32_0 = arith.constant 0 : i32
    return %arg0, %1 : i32, i32
  }
  func.func @transform_10(%arg0: i32, %arg1: i32, %arg2: i32) -> (i32, i32) {
    %c2_i32 = arith.constant 2 : i32
    %0 = arith.cmpi eq, %arg1, %c2_i32 : i32
    %c0_i32 = arith.constant 0 : i32
    %1 = arith.select %0, %arg2, %c0_i32 : i32
    %c0_i32_0 = arith.constant 0 : i32
    return %arg0, %1 : i32, i32
  }
}

</mosaic_0001>

<bundles_post_ra>
// kernel: syconetm_forward.1
= control target key start
LH: loop header
LB: loop body
LE: loop exit
PB: predicated region body
PF: predicated region fallthrough
CT: control target
= control target key end

     0   :  { %s3481_s0 = inlined_call_operand.vmem [shape: f32[16,256], index: 0, kind: input, shape index: {}]   ;;  %s3482_s1 = inlined_call_operand.vmem [shape: bf16[256,512], index: 1, kind: input, shape index: {}]   ;;  %s3483_s2 = inlined_call_operand.hbm [shape: f32[1,512], index: 2, kind: input, shape index: {}]   ;;  %s3484_s3 = inlined_call_operand.vmem [shape: f32[512,32], index: 3, kind: input, shape index: {}]   ;;  %s3485_s4 = inlined_call_operand.vmem [shape: f32[1,32], index: 4, kind: input, shape index: {}]   ;;  %s3486_s5 = inlined_call_operand.vmem [shape: f32[12,64], index: 5, kind: input, shape index: {}]   ;;  %s3487_s6 = inlined_call_operand.vmem [shape: f32[20,64], index: 6, kind: input, shape index: {}]   ;;  %s3488_s7 = inlined_call_operand.vmem [shape: bf16[64,256], index: 7, kind: input, shape index: {}]   ;;  %s3489_s8 = inlined_call_operand.vmem [shape: f32[16,32], index: 8, kind: output, shape index: {0}]   ;;  %s3490_s9 = inlined_call_operand.hbm [shape: f32[16,256], index: 9, kind: output, shape index: {1}]   ;;  %s3491_s10 = inlined_call_operand.hbm [shape: f32[16,256], index: 10, kind: output, shape index: {2}]  }
   0x1   :  { %3505 = sst [smem:[#allocation27_spill]] %s3481_s0 }
   0x2   :  { %3506 = sst [smem:[#allocation28_spill]] %s3482_s1 }
   0x3   :  { %3507 = sst [smem:[#allocation29_spill]] %s3483_s2 }
   0x4   :  { %3508 = sst [smem:[#allocation30_spill]] %s3484_s3 }
   0x5   :  { %3509 = sst [smem:[#allocation31_spill]] %s3485_s4 }
   0x6   :  { %3510 = sst [smem:[#allocation32_spill]] %s3486_s5 }
   0x7   :  { %3511 = sst [smem:[#allocation33_spill]] %s3487_s6 }
   0x8   :  { %3512 = sst [smem:[#allocation34_spill]] %s3489_s8 }
   0x9   :  { %3513 = sst [smem:[#allocation35_spill]] %s3490_s9 }
   0xa   :  { %3514 = sst [smem:[#allocation36_spill]] %s3491_s10 }
   0xb   :  { %16 = vsyncpa [#allocation11], 0 }
   0xc   :  { %17 = vsyncpa [#allocation12], 0 }
   0xd   :  { %19 = vsyncpa [#allocation12 + $0x1], 0 }
   0xe   :  { %20 = vsyncpa [#allocation16], 0 }
   0xf   :  { %22 = vsyncpa [#allocation16 + $0x1], 0  ;;  %s2889_s13 = smov 0   ;;  %s2891_s14 = smov 0  }
  0x10   :  { %s2893_s15 = smov 0   ;;  %s2895_s16 = smov 0  }
  0x11   :  { %s2897_s17 = smov 0   ;;  %s2899_s18 = smov 0  }
  0x12   :  { %s2901_s19 = smov 0   ;;  %s2903_s20 = smov 0  }
  0x13   :  { %s2905_s21 = smov 0   ;;  %s2907_s22 = smov 0  }
  0x14   :  { %s2909_s23 = smov 0   ;;  %s2911_s24 = smov 0  }
  0x15 LB: > { %3515 = sst [smem:[#allocation20_spill]] %s2807_s22  ;;  %s40_s27 = sadd.s32 1, %s2807_s22  ;;  %s2815_s24 = sphi %s2911_s24, %s28_s24   ;;  %s2811_s23 = sphi %s2909_s23, %s3554_s23   ;;  %s2807_s22 = sphi %s2907_s22, %s3553_s22   ;;  %s2803_s21 = sphi %s2905_s21, %s3552_s21   ;;  %s2799_s20 = sphi %s2903_s20, %s3551_s20   ;;  %s2795_s19 = sphi %s2901_s19, %s3561_s19   ;;  %s2791_s18 = sphi %s2899_s18, %s3560_s18   ;;  %s2787_s17 = sphi %s2897_s17, %s3559_s17   ;;  %s2783_s16 = sphi %s2895_s16, %s3558_s16   ;;  %s2779_s15 = sphi %s2893_s15, %s3557_s15   ;;  %s2775_s14 = sphi %s2891_s14, %s3556_s14   ;;  %s2771_s13 = sphi %s2889_s13, %s3555_s13  }
  0x16   : > { %3516 = sst [smem:[#allocation21_spill]] %s2811_s23  ;;  %s43_s28 = sadd.s32 1, %s2811_s23 }
  0x17   : > { %p41_p0 = scmp.ge.s32.totalorder %s40_s27, 2  ;;  %p51_p1 = scmp.eq.s32.totalorder %s2811_s23, 0 }
  0x18   : > { %s60_s29 = sadd.s32 1, %s2795_s19  ;;  %p67_p2 = scmp.ne.s32.totalorder %s2795_s19, %s2791_s18 }
  0x19   : > { %s3563_s27 = smov (%p41_p0, %s40_s27), 0  ;;  %s3565_s28 = smov (!%p41_p0, %s43_s28), %s2811_s23 }
  0x1a   : > { %3517 = sst [smem:[#allocation22_spill]] %s3563_s27  ;;  %p45_p3 = scmp.ge.s32.totalorder %s3565_s28, 3 }
  0x1b   : > { %s2961_s30 = scalar_select %p51_p1, %s2807_s22, 1 }
  0x1c   : > { %p68_p4 = scmp.eq.s32.totalorder %s2815_s24, 0  ;;  %s3567_s28 = smov (%p45_p3, %s3565_s28), 0 }
  0x1d   : > { %s2965_s11 = scalar_select %p51_p1, 0, %s2807_s22 }
  0x1e   : > { %3518 = sst [smem:[#allocation23_spill]] %s3567_s28  ;;  %p2969_p5 = por %p68_p4, %p67_p2 }
  0x1f   : > { %s225_s26 = sadd.s32 1, %s2787_s17  ;;  %p53_p6 = scmp.eq.s32.totalorder %s3567_s28, 0 }
  0x20   : > { %p232_p7 = scmp.ne.s32.totalorder %s2787_s17, %s2783_s16  ;;  %p274_p8 = scmp.eq.s32.totalorder %s2811_s23, 2 }
  0x21   : > { %p276_p9 = scmp.eq.s32.totalorder %s3567_s28, 2  ;;  %s283_s8 = sadd.s32 1, %s2779_s15 }
  0x22   : > { %s54_s25 = scalar_select %p53_p6, %s3563_s27, 1 }
  0x23   : > { %s221_s10 = scalar_select %p53_p6, 0, %s3563_s27 }
  0x24   : > { %s56_s9 = ssub.s32 %s2961_s30, %s54_s25  ;;  %p2982_p10 = por %p232_p7, %p68_p4 }
  0x25   : > { %p58_p11 = scmp.eq.s32.totalorder %s56_s9, 0  ;;  %s222_s5 = ssub.s32 %s2965_s11, %s221_s10 }
  0x26   : > { %s3520_s6 = scalar_select %p2982_p10, 1, 0 }
  0x27   : > { %p223_p12 = scmp.eq.s32.totalorder %s222_s5, 0  ;;  %p293_p13 = scmp.ne.s32.totalorder %s2779_s15, %s2775_s14 }
  0x28   : > { %s2989_s23 = scalar_select %p58_p11, %s2795_s19, %s60_s29  }
  0x29   : > { %s2992_s28 = scalar_select %p223_p12, %s2787_s17, %s225_s26  }
  0x2a   : > { %3521 = sst [smem:[#allocation24_spill]] %s2989_s23  ;;  %s3523_s25 = sadd.s32 4294967295, %s2815_s24  }
  0x2b   : > { %3522 = sst [smem:[#allocation25_spill]] %s2992_s28  ;;  %p294_p0 = scmp.eq.s32.totalorder %s3523_s25, 5 }
  0x2c   : > { %s275_s4 = scalar_select %p274_p8, %s2807_s22, 0 }
  0x2d   : > { %s277_s3 = scalar_select %p276_p9, %s3563_s27, 0 }
  0x2e   : > { %p299_p1 = scmp.ne.s32.totalorder %s2775_s14, %s2771_s13  ;;  %p3002_p3 = por %p294_p0, %p293_p13 }
  0x2f   : > { %s279_s1 = ssub.s32 %s275_s4, %s277_s3  ;;  %s3525_s5 = sadd.s32 4294967294, %s2815_s24  }
  0x30   : > { %p281_p2 = scmp.eq.s32.totalorder %s279_s1, 0  ;;  %p300_p4 = scmp.eq.s32.totalorder %s3525_s5, 5 }
  0x31   : > { %s3524_s9 = scalar_select %p3002_p3, 1, 0 }
  0x32   : > { %p2140_p6 = scmp.ge.s32.totalorder %s2815_s24, 1  ;;  %p3012_p7 = por %p300_p4, %p299_p1 }
  0x33   : > { %s3010_s10 = scalar_select %p281_p2, %s2779_s15, %s283_s8  }
  0x34   : > { %s3527_s26 = scalar_select %p3012_p7, 1, 0 }
  0x35   : > { %3526 = sst [smem:[#allocation26_spill]] %s3010_s10  ;;  %p339_p8 = scmp.lt.s32.totalorder %s2815_s24, 7 }
  0x36   : > { %s3528_s29 = smov %s3523_s25  ;;  %s2817_s3 = smov [#allocation10]  }
  0x37   : > { %p3019_p9 = scmp.eq.s32.totalorder %s3528_s29, 0  ;;  %p3023_p11 = pnand %p2140_p6, %p339_p8 }
  0x38   : > { %s352_s4 = sshll.u32 %s2817_s3, 4  ;;  %s353_s4 = int_to_ptr.vmem [resolvable:$true] %s352_s4 }
  0x39   : > { %p2398_p12 = pneg %p3023_p11  ;;  %s2642_s8 = scalar_lea.vmem %s353_s4, 64 }
  0x3a   : > { %p2643_p1 = scmp.ne.s32.totalorder %s353_s4, %s2642_s8  ;;  %p2650_p7 = scmp.lt.s32.totalorder %s353_s4, %s353_s4 }
  0x3b   : > { %p2399_p13 = pnand %p3019_p9, %p2398_p12  ;;  %p2651_p3 = scmp.lt.s32.totalorder %s2642_s8, %s2642_s8 }
  0x3d   : > { %p2633_p0 = pneg %p2399_p13  ;;  %p2652_p10 = por %p2651_p3, %p2650_p7 }
  0x3f   : > { %p2645_p2 = pnand %p2643_p1, %p2633_p0 }
  0x41   : > { %p2646_p4 = pneg %p2645_p2 }
  0x43   : > { %p2653_p6 = pnand %p2652_p10, %p2646_p4 }
  0x45   : > { %2656 = shalt.err (!%p2653_p6)
}
  0x46   : > { %s3531_s2 = sld [smem:[#allocation29_spill]]  ;;  %p2142_p8 = scmp.ge.s32.totalorder %s2815_s24, 6 }
  0x48   : > { %371 = sbr.rel (%p2142_p8) target bundleno = 98 (0x62), region = 36 }
  0x4c   : > { %2401 = dma.hbm_to_vmem [thread:$0]  (!%p2399_p13), %s3531_s2, 64, %s353_s4, [#allocation11]  }
  0x4d   : > { %374 = sbr.rel (!%p2969_p5) target bundleno = 88 (0x58), region = 40  ;;  %s376_s3 = sand.u32 (%p2969_p5), 1, %s2795_s19  }
  0x4e   : > { %s2144_s27 = sshll.u32 (%p2969_p5), %s2961_s30, 3  ;;  %s2143_s22 = sshll.u32 (%p2969_p5), %s376_s3, 4 }
  0x4f   : > { %s3532_s0 = sld [smem:[#allocation27_spill]] (%p2969_p5)  ;;  %s378_s10 = scalar_lea.vmem (%p2969_p5), [#allocation9], %s2143_s22 }
  0x55   : > { %s385_s28 = scalar_lea.vmem %s3532_s0, %s2144_s27 }
  0x56   : > { %v416_v0 = vld [vmem:[%s385_s28] sm:$0xff]  ;;  %v418_v1 = vld [vmem:[%s385_s28 + $0x10] sm:$0xff] }
  0x57   : > { %417 = vst [vmem:[%s378_s10] sm:$0xff] %v416_v0  ;;  %419 = vst [vmem:[%s378_s10 + $0x8] sm:$0xff] %v418_v1 }
  0x58 PF: > { %p3533_p10 = scmp.ne.s32.totalorder %s3520_s6, 0 }
  0x59   : > { %s441_s12 = sand.u32 (%p3533_p10), 1, %s2787_s17   ;;  %s2146_s4 = sshll.u32 (%p3533_p10), %s2965_s11, 2 }
  0x5a   : > { %439 = sbr.rel (!%p3533_p10) target bundleno = 98 (0x62), region = 82  ;;  %s2145_s5 = sshll.u32 (%p3533_p10), %s441_s12, 5 }
  0x5b   : > { %s447_s3 = scalar_lea.vmem (%p3533_p10), %s3488_s7, %s2146_s4  ;;  %s443_s23 = scalar_lea.vmem (%p3533_p10), [#allocation13], %s2145_s5 }
  0x5c   : > { %v464_v2 = vld [vmem:[%s447_s3] sm:$0xf] (%p3533_p10)  ;;  %v466_v3 = vld [vmem:[%s447_s3 + $0x8] sm:$0xf] (%p3533_p10)  ;;  %v468_v4 = vld [vmem:[%s447_s3 + $0x10] sm:$0xf] (%p3533_p10) }
  0x5d   : > { %465 = vst [vmem:[%s443_s23] sm:$0xf] (%p3533_p10), %v464_v2  ;;  %467 = vst [vmem:[%s443_s23 + $0x4] sm:$0xf] (%p3533_p10), %v466_v3  ;;  %v470_v5 = vld [vmem:[%s447_s3 + $0x18] sm:$0xf] (%p3533_p10) }
  0x5e   : > { %v472_v6 = vld [vmem:[%s447_s3 + $0x20] sm:$0xf] (%p3533_p10)  ;;  %469 = vst [vmem:[%s443_s23 + $0x8] sm:$0xf] (%p3533_p10), %v468_v4  ;;  %471 = vst [vmem:[%s443_s23 + $0xc] sm:$0xf] (%p3533_p10), %v470_v5 }
  0x5f   : > { %473 = vst [vmem:[%s443_s23 + $0x10] sm:$0xf] %v472_v6  ;;  %v474_v7 = vld [vmem:[%s447_s3 + $0x28] sm:$0xf]  ;;  %v476_v8 = vld [vmem:[%s447_s3 + $0x30] sm:$0xf] }
  0x60   : > { %v478_v9 = vld [vmem:[%s447_s3 + $0x38] sm:$0xf]  ;;  %475 = vst [vmem:[%s443_s23 + $0x14] sm:$0xf] %v474_v7  ;;  %477 = vst [vmem:[%s443_s23 + $0x18] sm:$0xf] %v476_v8 }
  0x61   : > { %479 = vst [vmem:[%s443_s23 + $0x1c] sm:$0xf] %v478_v9 }
  0x62 PF: > { %522 = sbr.rel (%p3023_p11) target bundleno = 2174 (0x87e), region = 123  ;;  %s525_s6 = sand.u32 (!%p3023_p11), 1, %s2791_s18  }
  0x63   : > { %s3052_s22 = sshll.u32 (!%p3023_p11), %s525_s6, 4 }
  0x64   : > { %s527_s27 = scalar_lea.vmem (!%p3023_p11), [#allocation9], %s3052_s22 }
  0x67   : > { %2758 = dma.done.wait (%p3019_p9), [#allocation11], 64  }
  0x68   : > { %2760 = vsyncadd (%p3019_p9), [#allocation11], 4294967232  ;;  %s536_s28 = sand.u32 1, %s2783_s16   ;;  %s3061_s11 = sand.u32 1, %s2775_s14  }
  0x69   : > { %s2150_s10 = sshll.u32 %s536_s28, 5  ;;  %s2151_s1 = sshll.u32 %s3061_s11, 4 }
  0x6a   : > { %p598_p5 = scmp.eq.s32.totalorder %s2803_s21, 0  ;;  %s3534_s25 = sld [smem:[#allocation28_spill]] }
  0x6b   : > { %s3071_s29 = scalar_lea.vmem [#allocation13], %s2150_s10  ;;  %s3073_s3 = scalar_lea.vmem [#allocation14], %s2151_s1 }
  0x6c   : > { %s599_s18 = scalar_select %p598_p5, %s2799_s20, 1 }
  0x6d   : > { %s3075_s16 = scalar_lea.vmem [#allocation15], %s2151_s1  ;;  %p2156_p7 = scmp.ne.s32.totalorder %s2803_s21, 0 }
  0x6e   : > { %s2153_s8 = sshll.u32 %s599_s18, 4  ;;  %p2157_p9 = scmp.ne.s32.totalorder (!%p2156_p7), %s2799_s20, 0 }
  0x6f   : > { %p601_p3 = scmp.lt.s32.totalorder %s2153_s8, 31  ;;  %627 = sbr.rel (%p2156_p7) target bundleno = 1230 (0x4ce), region = 139 }
  0x71   : > { %s3569_s8 = smov (!%p601_p3, %s2153_s8), 31 }
  0x72   : > { %s2220_s12 = sshll.u32 %s3569_s8, 4 }
  0x73   : > { %s3069_s30 = scalar_lea.vmem %s3534_s25, %s2220_s12 }
  0x74   : > { %631 = sbr.rel (%p2157_p9) target bundleno = 126 (0x7e), region = 143 }
  0x79   : > { %v2818_v10 = vmov 0.0  }
  0x7a   : > { %632 = vst [vmem:[#allocation2 + $0x30] sm:$0xff] %v2818_v10  ;;  %633 = vst [vmem:[#allocation2] sm:$0xff] %v2818_v10 }
  0x7b   : > { %634 = vst [vmem:[#allocation2 + $0x18] sm:$0xff] %v2818_v10  ;;  %635 = vst [vmem:[#allocation2 + $0x10] sm:$0xff] %v2818_v10 }
  0x7c   : > { %636 = vst [vmem:[#allocation2 + $0x8] sm:$0xff] %v2818_v10  ;;  %637 = vst [vmem:[#allocation2 + $0x20] sm:$0xff] %v2818_v10 }
  0x7d   : > { %638 = vst [vmem:[#allocation2 + $0x28] sm:$0xff] %v2818_v10  ;;  %639 = vst [vmem:[#allocation2 + $0x38] sm:$0xff] %v2818_v10 }
  0x7e PF: > { %v2523_v11 = vld [vmem:[%s3069_s30 + $0xe4] ss:$16 sps:$4 sm:$0xff]   ;;  %v2525_v12 = vld [vmem:[%s3069_s30 + $0xec] ss:$16 sps:$4 sm:$0xff]   ;;  %v2819_v13 = vmov 0   ;;  %p2190_p11 = scmp.ne.s32.totalorder %s2799_s20, 1 }
  0x7f   : > { %875 = vmatprep.mubr.bf16.mxu0 %v2819_v13  ;;  %918 = vmatprep.mubr.bf16.mxu1 %v2819_v13  ;;  %v2527_v14 = vld [vmem:[%s3069_s30 + $0xe0] ss:$16 sps:$4 sm:$0xff]   ;;  %v2528_v15 = vld [vmem:[%s3069_s30 + $0xe8] ss:$16 sps:$4 sm:$0xff]   ;;  %v2529_v16 = vld [vmem:[%s3069_s30 + $0xc4] ss:$16 sps:$4 sm:$0xff]  }
  0x80   : > { %843 = vmatprep.subr.bf16.mxu0 %v2523_v11  ;;  %886 = vmatprep.subr.bf16.mxu1 %v2525_v12  ;;  %v2531_v17 = vld [vmem:[%s3069_s30 + $0xcc] ss:$16 sps:$4 sm:$0xff]   ;;  %v2533_v18 = vld [vmem:[%s3069_s30 + $0xc0] ss:$16 sps:$4 sm:$0xff]   ;;  %v2534_v19 = vld [vmem:[%s3069_s30 + $0xc8] ss:$16 sps:$4 sm:$0xff]  }
  0x81   : > { %844 = vmatpush1.bf16.msra.mxu0 %v2527_v14  ;;  %887 = vmatpush1.bf16.msra.mxu1 %v2528_v15  ;;  %v2535_v20 = vld [vmem:[%s3069_s30 + $0xa4] ss:$16 sps:$4 sm:$0xff]   ;;  %v2537_v21 = vld [vmem:[%s3069_s30 + $0xac] ss:$16 sps:$4 sm:$0xff]   ;;  %v2539_v22 = vld [vmem:[%s3069_s30 + $0xa0] ss:$16 sps:$4 sm:$0xff]  }
  0x82   : > { %845 = vmatprep.subr.bf16.mxu0 %v2529_v16  ;;  %888 = vmatprep.subr.bf16.mxu1 %v2531_v17  ;;  %v2540_v23 = vld [vmem:[%s3069_s30 + $0xa8] ss:$16 sps:$4 sm:$0xff]   ;;  %v2541_v24 = vld [vmem:[%s3069_s30 + $0x84] ss:$16 sps:$4 sm:$0xff]   ;;  %v2543_v25 = vld [vmem:[%s3069_s30 + $0x8c] ss:$16 sps:$4 sm:$0xff]  }
  0x83   : > { %v2545_v26 = vld [vmem:[%s3069_s30 + $0x80] ss:$16 sps:$4 sm:$0xff]   ;;  %v2546_v27 = vld [vmem:[%s3069_s30 + $0x88] ss:$16 sps:$4 sm:$0xff]   ;;  %v2547_v28 = vld [vmem:[%s3069_s30 + $0x64] ss:$16 sps:$4 sm:$0xff]  }
  0x84   : > { %v2549_v29 = vld [vmem:[%s3069_s30 + $0x6c] ss:$16 sps:$4 sm:$0xff]   ;;  %v2551_v30 = vld [vmem:[%s3069_s30 + $0x60] ss:$16 sps:$4 sm:$0xff]   ;;  %v2552_v31 = vld [vmem:[%s3069_s30 + $0x68] ss:$16 sps:$4 sm:$0xff]  }
  0x85   : > { %846 = vmatpush1.bf16.msra.mxu0 %v2533_v18  ;;  %889 = vmatpush1.bf16.msra.mxu1 %v2534_v19  ;;  %v2553_v32 = vld [vmem:[%s3069_s30 + $0x44] ss:$16 sps:$4 sm:$0xff]   ;;  %v2555_v33 = vld [vmem:[%s3069_s30 + $0x4c] ss:$16 sps:$4 sm:$0xff]   ;;  %v2557_v34 = vld [vmem:[%s3069_s30 + $0x40] ss:$16 sps:$4 sm:$0xff]  }
  0x86   : > { %847 = vmatprep.subr.bf16.mxu0 %v2535_v20  ;;  %890 = vmatprep.subr.bf16.mxu1 %v2537_v21  ;;  %v2558_v35 = vld [vmem:[%s3069_s30 + $0x48] ss:$16 sps:$4 sm:$0xff]   ;;  %v2559_v36 = vld [vmem:[%s3069_s30 + $0x24] ss:$16 sps:$4 sm:$0xff]   ;;  %v2561_v37 = vld [vmem:[%s3069_s30 + $0x2c] ss:$16 sps:$4 sm:$0xff]  }
  0x87   : > { %v2563_v38 = vld [vmem:[%s3069_s30 + $0x20] ss:$16 sps:$4 sm:$0xff]   ;;  %v2564_v39 = vld [vmem:[%s3069_s30 + $0x28] ss:$16 sps:$4 sm:$0xff]   ;;  %v2565_v40 = vld [vmem:[%s3069_s30 + $0x4] ss:$16 sps:$4 sm:$0xff]  }
  0x88   : > { %v2567_v41 = vld [vmem:[%s3069_s30 + $0xc] ss:$16 sps:$4 sm:$0xff]   ;;  %v2569_v42 = vld [vmem:[%s3069_s30] ss:$16 sps:$4 sm:$0xff]   ;;  %v2570_v43 = vld [vmem:[%s3069_s30 + $0x8] ss:$16 sps:$4 sm:$0xff]  }
  0x89   : > { %848 = vmatpush1.bf16.msra.mxu0 %v2539_v22  ;;  %891 = vmatpush1.bf16.msra.mxu1 %v2540_v23  ;;  %v648_v44 = vld [vmem:[%s527_s27] sm:$0xff]  ;;  %v649_v45 = vld [vmem:[%s527_s27 + $0x8] sm:$0xff]  ;;  %s3535_s22 = sld [smem:[#allocation30_spill]] (!%p2190_p11)  ;;  %s2820_s1 = smov (!%p2190_p11), 116  }
  0x8a   : > { %849 = vmatprep.subr.bf16.mxu0 %v2541_v24  ;;  %892 = vmatprep.subr.bf16.mxu1 %v2543_v25  ;;  %v650_v46 = vpack.c.bf16 %v649_v45, %v648_v44  ;;  %v640_v47 = vld [vmem:[#allocation2 + $0x30] sm:$0xff]  ;;  %v642_v48 = vld [vmem:[#allocation2 + $0x18] sm:$0xff]  ;;  %v641_v51 = vld [vmem:[#allocation2] sm:$0xff]  ;;  %s3537_s6 = sld [smem:[#allocation31_spill]] (!%p2190_p11) }
  0x8b   : > { %v643_v52 = vld [vmem:[#allocation2 + $0x10] sm:$0xff]  ;;  %v644_v57 = vld [vmem:[#allocation2 + $0x8] sm:$0xff]  ;;  %v645_v63 = vld [vmem:[#allocation2 + $0x20] sm:$0xff]  ;;  %s3538_s10 = sld [smem:[#allocation34_spill]] (!%p2190_p11) }
  0x8c   : > { %v646_v58 = vld [vmem:[#allocation2 + $0x28] sm:$0xff]  ;;  %v647_v0 = vld [vmem:[#allocation2 + $0x38] sm:$0xff]  ;;  %s3539_s5 = sld [smem:[#allocation32_spill]] (!%p2190_p11) }
  0x8d   : > { %850 = vmatpush1.bf16.msra.mxu0 %v2545_v26  ;;  %893 = vmatpush1.bf16.msra.mxu1 %v2546_v27 }
  0x8e   : > { %851 = vmatprep.subr.bf16.mxu0 %v2547_v28  ;;  %894 = vmatprep.subr.bf16.mxu1 %v2549_v29 }
  0x8f   : > { %s3536_s27 = smov (!%p2190_p11), %s3535_s22 }
  0x91   : > { %852 = vmatpush1.bf16.msra.mxu0 %v2551_v30  ;;  %895 = vmatpush1.bf16.msra.mxu1 %v2552_v31 }
  0x92   : > { %853 = vmatprep.subr.bf16.mxu0 %v2553_v32  ;;  %896 = vmatprep.subr.bf16.mxu1 %v2555_v33 }
  0x95   : > { %854 = vmatpush1.bf16.msra.mxu0 %v2557_v34  ;;  %897 = vmatpush1.bf16.msra.mxu1 %v2558_v35 }
  0x96   : > { %855 = vmatprep.subr.bf16.mxu0 %v2559_v36  ;;  %898 = vmatprep.subr.bf16.mxu1 %v2561_v37 }
  0x99   : > { %856 = vmatpush1.bf16.msra.mxu0 %v2563_v38  ;;  %899 = vmatpush1.bf16.msra.mxu1 %v2564_v39 }
  0x9a   : > { %857 = vmatprep.subr.bf16.mxu0 %v2565_v40  ;;  %900 = vmatprep.subr.bf16.mxu1 %v2567_v41 }
  0x9d   : > { %858 = vmatpush1.bf16.msra.mxu0 %v2569_v42  ;;  %901 = vmatpush1.bf16.msra.mxu1 %v2570_v43 }
  0xa0   : > { %876 = vmatmul.mubr.bf16.vlgmr.msra.gmra.mxu0 %v650_v46  ;;  %919 = vmatmul.mubr.bf16.vlgmr.msra.gmra.mxu1 %v650_v46 }
 0x160   : > { %v877_v49 = vpop.f32.mrf.mxu0  ;;  %v920_v50 = vpop.f32.mrf.mxu1 }
 0x161   : > { %v929_v53 = vadd.f32 %v877_v49, %v640_v47  ;;  %v931_v54 = vadd.f32 %v920_v50, %v642_v48 }
 0x162   : > { %v879_v55 = vpop.f32.mrf.mxu0  ;;  %v922_v56 = vpop.f32.mrf.mxu1 }
 0x163   : > { %937 = vst [vmem:[#allocation2 + $0x30] sm:$0xff] %v929_v53  ;;  %939 = vst [vmem:[#allocation2 + $0x18] sm:$0xff] %v931_v54  ;;  %v930_v59 = vadd.f32 %v879_v55, %v641_v51  ;;  %v932_v60 = vadd.f32 %v922_v56, %v643_v52 }
 0x164   : > { %v881_v61 = vpop.f32.mrf.mxu0  ;;  %v924_v62 = vpop.f32.mrf.mxu1 }
 0x165   : > { %938 = vst [vmem:[#allocation2] sm:$0xff] %v930_v59  ;;  %940 = vst [vmem:[#allocation2 + $0x10] sm:$0xff] %v932_v60  ;;  %v933_v1 = vadd.f32 %v881_v61, %v644_v57  ;;  %v935_v2 = vadd.f32 %v924_v62, %v646_v58  ;;  %948 = sbr.rel (%p2190_p11) target bundleno = 1230 (0x4ce), region = 147 }
 0x166   : > { %v883_v3 = vpop.f32.mrf.mxu0  ;;  %v926_v4 = vpop.f32.mrf.mxu1 }
 0x167   : > { %941 = vst [vmem:[#allocation2 + $0x8] sm:$0xff] %v933_v1  ;;  %943 = vst [vmem:[#allocation2 + $0x28] sm:$0xff] %v935_v2  ;;  %v934_v5 = vadd.f32 %v883_v3, %v645_v63  ;;  %v936_v6 = vadd.f32 %v926_v4, %v647_v0 }
 0x169   : > { %942 = vst [vmem:[#allocation2 + $0x20] sm:$0xff] %v934_v5  ;;  %944 = vst [vmem:[#allocation2 + $0x38] sm:$0xff] %v936_v6 }
 0x16a   : > { %v1026_v7 = vld [vmem:[%s3535_s22 + $0xf8] sm:$0xff]  ;;  %v1025_v11 = vld [vmem:[%s3536_s27 + $0xf0] sm:$0xff]  ;;  %v1024_v15 = vld [vmem:[%s3536_s27 + $0xe8] sm:$0xff]  ;;  %v959_v33 = vlaneseq  ;;  %vm1250_vm1 = vcmask 261120   ;;  %vm1253_vm3 = vcmask 97280   ;;  %vm1272_vm4 = vcmask 162816  }
 0x16b   : > { %v1058_v8 = vld [vmem:[%s3536_s27 + $0x1f8] sm:$0xff]  ;;  %2221 = vmatprep.subr.mxu0 %v1026_v7  ;;  %v1057_v12 = vld [vmem:[%s3536_s27 + $0x1f0] sm:$0xff]  ;;  %v1056_v16 = vld [vmem:[%s3536_s27 + $0x1e8] sm:$0xff]  ;;  %vm1291_vm5 = vcmask 1043456   ;;  %s3540_s22 = sld [smem:[#allocation33_spill]]  ;;  %vm1470_vm6 = vcmask 7168  }
 0x16c   : > { %v1010_v9 = vld [vmem:[%s3536_s27 + $0x78] sm:$0xff]  ;;  %2259 = vmatprep.subr.mxu1 %v1058_v8  ;;  %v1009_v13 = vld [vmem:[%s3536_s27 + $0x70] sm:$0xff]  ;;  %v1008_v17 = vld [vmem:[%s3536_s27 + $0x68] sm:$0xff]  ;;  %v960_v42 = vshrl.u32 %v959_v33, 7  ;;  %vm1372_vm7 = vcmask 523264  }
 0x16d   : > { %v1042_v10 = vld [vmem:[%s3536_s27 + $0x178] sm:$0xff]  ;;  %2222 = vmatpush3.msra.mxu0 %v1010_v9  ;;  %v1041_v14 = vld [vmem:[%s3536_s27 + $0x170] sm:$0xff]  ;;  %v1040_v18 = vld [vmem:[%s3536_s27 + $0x168] sm:$0xff] }
 0x16e   : > { %2260 = vmatpush3.msra.mxu1 %v1042_v10  ;;  %2223 = vmatprep.subr.mxu0 %v1025_v11  ;;  %v1023_v19 = vld [vmem:[%s3536_s27 + $0xe0] sm:$0xff]  ;;  %v1022_v23 = vld [vmem:[%s3536_s27 + $0xd8] sm:$0xff]  ;;  %v1021_v27 = vld [vmem:[%s3536_s27 + $0xd0] sm:$0xff]  ;;  %v965_v52 = vsub.s32 1, %v960_v42  ;;  %v973_v53 = vsub.s32 3, %v960_v42  ;;  %v961_v54 = vsub.s32 0, %v960_v42 }
 0x16f   : > { %2261 = vmatprep.subr.mxu1 %v1057_v12  ;;  %2224 = vmatpush3.msra.mxu0 %v1009_v13  ;;  %v1055_v20 = vld [vmem:[%s3536_s27 + $0x1e0] sm:$0xff]  ;;  %v1054_v24 = vld [vmem:[%s3536_s27 + $0x1d8] sm:$0xff]  ;;  %v1053_v28 = vld [vmem:[%s3536_s27 + $0x1d0] sm:$0xff]  ;;  %v969_v58 = vsub.s32 2, %v960_v42 }
 0x170   : > { %2262 = vmatpush3.msra.mxu1 %v1041_v14  ;;  %2225 = vmatprep.subr.mxu0 %v1024_v15  ;;  %v1007_v21 = vld [vmem:[%s3536_s27 + $0x60] sm:$0xff]  ;;  %v1006_v25 = vld [vmem:[%s3536_s27 + $0x58] sm:$0xff]  ;;  %v1005_v29 = vld [vmem:[%s3536_s27 + $0x50] sm:$0xff] }
 0x171   : > { %2263 = vmatprep.subr.mxu1 %v1056_v16  ;;  %v1039_v22 = vld [vmem:[%s3536_s27 + $0x160] sm:$0xff]  ;;  %2226 = vmatpush3.msra.mxu0 %v1008_v17  ;;  %v1038_v26 = vld [vmem:[%s3536_s27 + $0x158] sm:$0xff]  ;;  %v1037_v30 = vld [vmem:[%s3536_s27 + $0x150] sm:$0xff]  ;;  %s3541_s28 = smov %s3540_s22 }
 0x172   : > { %2264 = vmatpush3.msra.mxu1 %v1040_v18  ;;  %2227 = vmatprep.subr.mxu0 %v1023_v19  ;;  %v1020_v31 = vld [vmem:[%s3536_s27 + $0xc8] sm:$0xff]  ;;  %v1019_v36 = vld [vmem:[%s3536_s27 + $0xc0] sm:$0xff]  ;;  %v1018_v40 = vld [vmem:[%s3536_s27 + $0xb8] sm:$0xff] }
 0x173   : > { %2265 = vmatprep.subr.mxu1 %v1055_v20  ;;  %2228 = vmatpush3.msra.mxu0 %v1007_v21  ;;  %v1052_v32 = vld [vmem:[%s3536_s27 + $0x1c8] sm:$0xff]  ;;  %v1051_v37 = vld [vmem:[%s3536_s27 + $0x1c0] sm:$0xff]  ;;  %v1050_v41 = vld [vmem:[%s3536_s27 + $0x1b8] sm:$0xff] }
 0x174   : > { %2266 = vmatpush3.msra.mxu1 %v1039_v22  ;;  %2229 = vmatprep.subr.mxu0 %v1022_v23  ;;  %v1004_v34 = vld [vmem:[%s3536_s27 + $0x48] sm:$0xff]  ;;  %v1003_v38 = vld [vmem:[%s3536_s27 + $0x40] sm:$0xff]  ;;  %v1002_v43 = vld [vmem:[%s3536_s27 + $0x38] sm:$0xff] }
 0x175   : > { %2267 = vmatprep.subr.mxu1 %v1054_v24  ;;  %2230 = vmatpush3.msra.mxu0 %v1006_v25  ;;  %v1036_v35 = vld [vmem:[%s3536_s27 + $0x148] sm:$0xff]  ;;  %v1035_v39 = vld [vmem:[%s3536_s27 + $0x140] sm:$0xff]  ;;  %v1034_v44 = vld [vmem:[%s3536_s27 + $0x138] sm:$0xff] }
 0x176   : > { %2268 = vmatpush3.msra.mxu1 %v1038_v26  ;;  %2231 = vmatprep.subr.mxu0 %v1021_v27  ;;  %v1017_v45 = vld [vmem:[%s3536_s27 + $0xb0] sm:$0xff]  ;;  %v1016_v49 = vld [vmem:[%s3536_s27 + $0xa8] sm:$0xff]  ;;  %v1015_v56 = vld [vmem:[%s3536_s27 + $0xa0] sm:$0xff] }
 0x177   : > { %2269 = vmatprep.subr.mxu1 %v1053_v28  ;;  %2232 = vmatpush3.msra.mxu0 %v1005_v29  ;;  %v1049_v46 = vld [vmem:[%s3536_s27 + $0x1b0] sm:$0xff]  ;;  %v1048_v50 = vld [vmem:[%s3536_s27 + $0x1a8] sm:$0xff]  ;;  %v1047_v57 = vld [vmem:[%s3536_s27 + $0x1a0] sm:$0xff] }
 0x178   : > { %2270 = vmatpush3.msra.mxu1 %v1037_v30  ;;  %2233 = vmatprep.subr.mxu0 %v1020_v31  ;;  %v1001_v47 = vld [vmem:[%s3536_s27 + $0x30] sm:$0xff]  ;;  %v1000_v51 = vld [vmem:[%s3536_s27 + $0x28] sm:$0xff]  ;;  %v999_v59 = vld [vmem:[%s3536_s27 + $0x20] sm:$0xff] }
 0x179   : > { %2271 = vmatprep.subr.mxu1 %v1052_v32  ;;  %2234 = vmatpush3.msra.mxu0 %v1004_v34  ;;  %v1033_v48 = vld [vmem:[%s3536_s27 + $0x130] sm:$0xff]  ;;  %v1032_v55 = vld [vmem:[%s3536_s27 + $0x128] sm:$0xff]  ;;  %v1031_v60 = vld [vmem:[%s3536_s27 + $0x120] sm:$0xff] }
 0x17a   : > { %2272 = vmatpush3.msra.mxu1 %v1036_v35  ;;  %2235 = vmatprep.subr.mxu0 %v1019_v36  ;;  %v1014_v61 = vld [vmem:[%s3536_s27 + $0x98] sm:$0xff]  ;;  %v950_v63 = vld [vmem:[#allocation2] sm:$0xff]  ;;  %v952_v4 = vld [vmem:[#allocation2 + $0x10] sm:$0xff] }
 0x17b   : > { %2273 = vmatprep.subr.mxu1 %v1051_v37  ;;  %2236 = vmatpush3.msra.mxu0 %v1003_v38  ;;  %v1046_v62 = vld [vmem:[%s3536_s27 + $0x198] sm:$0xff]  ;;  %v957_v0 = vld [vmem:[#allocation10] sm:$0xf]  ;;  %v1013_v7 = vld [vmem:[%s3536_s27 + $0x90] sm:$0xff] }
 0x17c   : > { %2274 = vmatpush3.msra.mxu1 %v1035_v39  ;;  %2237 = vmatprep.subr.mxu0 %v1018_v40  ;;  %v998_v1 = vld [vmem:[%s3536_s27 + $0x18] sm:$0xff]  ;;  %v966_v3 = vrot.slane %v957_v0, %v965_v52  ;;  %v974_v5 = vrot.slane %v957_v0, %v973_v53  ;;  %v962_v6 = vrot.slane %v957_v0, %v961_v54  ;;  %v949_v8 = vld [vmem:[#allocation2 + $0x30] sm:$0xff]  ;;  %v954_v13 = vld [vmem:[#allocation2 + $0x20] sm:$0xff] }
 0x17d   : > { %2275 = vmatprep.subr.mxu1 %v1050_v41  ;;  %2238 = vmatpush3.msra.mxu0 %v1002_v43  ;;  %v1030_v2 = vld [vmem:[%s3536_s27 + $0x118] sm:$0xff]  ;;  %v970_v10 = vrot.slane %v957_v0, %v969_v58  ;;  %v1045_v11 = vld [vmem:[%s3536_s27 + $0x190] sm:$0xff]  ;;  %v1012_v18 = vld [vmem:[%s3536_s27 + $0x88] sm:$0xff] }
 0x17e   : > { %2276 = vmatpush3.msra.mxu1 %v1034_v44  ;;  %2239 = vmatprep.subr.mxu0 %v1017_v45  ;;  %v951_v9 = vld [vmem:[#allocation2 + $0x18] sm:$0xff]  ;;  %v980_v12 = vadd.f32 %v966_v3, %v950_v63  ;;  %v997_v15 = vld [vmem:[%s3536_s27 + $0x10] sm:$0xff]  ;;  %v982_v17 = vadd.f32 %v974_v5, %v952_v4  ;;  %v1044_v19 = vld [vmem:[%s3536_s27 + $0x188] sm:$0xff]  ;;  %v979_v21 = vadd.f32 %v962_v6, %v949_v8 }
 0x17f   : > { %2277 = vmatprep.subr.mxu1 %v1049_v46  ;;  %2240 = vmatpush3.msra.mxu0 %v1001_v47  ;;  %v956_v14 = vld [vmem:[#allocation2 + $0x38] sm:$0xff]  ;;  %v1029_v16 = vld [vmem:[%s3536_s27 + $0x110] sm:$0xff]  ;;  %v996_v20 = vld [vmem:[%s3536_s27 + $0x8] sm:$0xff]  ;;  %v981_v22 = vadd.f32 %v970_v10, %v951_v9  ;;  %v984_v24 = vadd.f32 %v966_v3, %v954_v13 }
 0x180   : > { %2278 = vmatpush3.msra.mxu1 %v1033_v48  ;;  %2241 = vmatprep.subr.mxu0 %v1016_v49  ;;  %v1028_v23 = vld [vmem:[%s3536_s27 + $0x108] sm:$0xff]  ;;  %v986_v25 = vadd.f32 %v974_v5, %v956_v14  ;;  %v1011_v28 = vld [vmem:[%s3536_s27 + $0x80] sm:$0xff]  ;;  %v988_v30 = vmax.f32 %v980_v12, 0.0  ;;  %v990_v32 = vmax.f32 %v982_v17, 0.0  ;;  %v987_v34 = vmax.f32 %v979_v21, 0.0 }
 0x181   : > { %2279 = vmatprep.subr.mxu1 %v1048_v50  ;;  %2242 = vmatpush3.msra.mxu0 %v1000_v51  ;;  %v953_v26 = vld [vmem:[#allocation2 + $0x8] sm:$0xff]  ;;  %v1043_v29 = vld [vmem:[%s3536_s27 + $0x180] sm:$0xff]  ;;  %v989_v35 = vmax.f32 %v981_v22, 0.0  ;;  %v992_v38 = vmax.f32 %v984_v24, 0.0 }
 0x182   : > { %2280 = vmatpush3.msra.mxu1 %v1032_v55  ;;  %2243 = vmatprep.subr.mxu0 %v1015_v56  ;;  %v955_v27 = vld [vmem:[#allocation2 + $0x28] sm:$0xff]  ;;  %v995_v31 = vld [vmem:[%s3536_s27] sm:$0xff]  ;;  %v983_v36 = vadd.f32 %v962_v6, %v953_v26  ;;  %v994_v39 = vmax.f32 %v986_v25, 0.0 }
 0x183   : > { %2281 = vmatprep.subr.mxu1 %v1047_v57  ;;  %2244 = vmatpush3.msra.mxu0 %v999_v59  ;;  %v1027_v33 = vld [vmem:[%s3536_s27 + $0x100] sm:$0xff]  ;;  %v985_v37 = vadd.f32 %v970_v10, %v955_v27 }
 0x184   : > { %2282 = vmatpush3.msra.mxu1 %v1031_v60  ;;  %2245 = vmatprep.subr.mxu0 %v1014_v61  ;;  %v991_v40 = vmax.f32 %v983_v36, 0.0  ;;  %v2191_v44 = vld [vmem:[%s3537_s6] ss:$0 sm:$0xff]  ;;  %v1376_v36 = vld [vmem:[%s3541_s28 + $0x8] sm:$0xff] }
 0x185   : > { %2283 = vmatprep.subr.mxu1 %v1046_v62  ;;  %2246 = vmatpush3.msra.mxu0 %v998_v1  ;;  %v993_v41 = vmax.f32 %v985_v37, 0.0 }
 0x186   : > { %2284 = vmatpush3.msra.mxu1 %v1030_v2  ;;  %2247 = vmatprep.subr.mxu0 %v1013_v7 }
 0x187   : > { %2285 = vmatprep.subr.mxu1 %v1045_v11  ;;  %2248 = vmatpush3.msra.mxu0 %v997_v15 }
 0x188   : > { %2286 = vmatpush3.msra.mxu1 %v1029_v16  ;;  %2249 = vmatprep.subr.mxu0 %v1012_v18 }
 0x189   : > { %2287 = vmatprep.subr.mxu1 %v1044_v19  ;;  %2250 = vmatpush3.msra.mxu0 %v996_v20 }
 0x18a   : > { %2288 = vmatpush3.msra.mxu1 %v1028_v23  ;;  %2251 = vmatprep.subr.mxu0 %v1011_v28 }
 0x18b   : > { %2289 = vmatprep.subr.mxu1 %v1043_v29  ;;  %2252 = vmatpush3.msra.mxu0 %v995_v31 }
 0x18c   : > { %1130 = vmatprep.mubr.f32.mxu0 %v988_v30  ;;  %2290 = vmatpush3.msra.mxu1 %v1027_v33  ;;  %v1284_v33 = vld [vmem:[%s3539_s5 + $0x8] sm:$0xf] }
 0x18d   : > { %1205 = vmatprep.mubr.f32.mxu1 %v990_v32  ;;  %1131 = vmatmul.mubr.f32.vlgmr.msra.gmra.mxu0 %v987_v34  ;;  %v1283_v34 = vld [vmem:[%s3539_s5] sm:$0xff] }
 0x18e   : > { %1206 = vmatmul.mubr.f32.vlgmr.msra.gmra.mxu1 %v989_v35  ;;  %1135 = vmatprep.mubr.f32.mxu0 %v992_v38  ;;  %v1377_v35 = vld [vmem:[%s3540_s22 + $0x10] sm:$0xf] }
 0x18f   : > { %1210 = vmatprep.mubr.f32.mxu1 %v994_v39  ;;  %2326 = vmatprep.subr.msk.mxu0 %vm1291_vm5, %v1284_v33 }
 0x190   : > { %2327 = vmatpush3.msk.msra.mxu0 %vm1291_vm5, %v1284_v33  ;;  %2333 = vmatprep.subr.msk.mxu1 %vm1291_vm5, %v1377_v35 }
 0x191   : > { %1136 = vmatmul.mubr.f32.gmra.mxu0 %v991_v40  ;;  %2328 = vmatprep.subr.mxu0 %v1283_v34 }
 0x192   : > { %1211 = vmatmul.mubr.f32.gmra.mxu1 %v993_v41  ;;  %2329 = vmatpush3.msra.mxu0 %v1283_v34 }
 0x193   : > { %2334 = vmatpush3.msk.msra.mxu1 %vm1291_vm5, %v1377_v35 }
 0x194   : > { %2335 = vmatprep.subr.mxu1 %v1376_v36 }
 0x195   : > { %2336 = vmatpush3.msra.mxu1 %v1376_v36 }
 0x24d   : > { %v2253_v42 = vpop.f32.mrf.mxu0 }
 0x24e   : > { %v2291_v43 = vpop.f32.mrf.mxu1 }
 0x24f   : > { %v2254_v45 = vpop.f32.mrf.mxu0 }
 0x250   : > { %v2292_v46 = vpop.f32.mrf.mxu1  ;;  %v2255_v47 = vadd.f32 %v2254_v45, %v2253_v42  ;;  %v1375_v42 = vld [vmem:[%s3541_s28] sm:$0xff] }
 0x251   : > { %v2256_v48 = vpop.f32.mrf.mxu0  ;;  %v2293_v51 = vadd.f32 %v2292_v46, %v2291_v43  ;;  %2337 = vmatprep.subr.mxu1 %v1375_v42 }
 0x252   : > { %v2294_v49 = vpop.f32.mrf.mxu1  ;;  %v1133_v50 = vadd.f32 %v2255_v47, %v2191_v44  ;;  %2338 = vmatpush3.msra.mxu1 %v1375_v42 }
 0x253   : > { %v2257_v52 = vpop.f32.mrf.mxu0 }
 0x254   : > { %v2295_v53 = vpop.f32.mrf.mxu1  ;;  %v1208_v54 = vadd.f32 %v2293_v51, %v1133_v50  ;;  %v2258_v55 = vadd.f32 %v2257_v52, %v2256_v48  ;;  %v2821_v52 = vmov -inf  }
 0x255   : > { %v2296_v58 = vadd.f32 %v2295_v53, %v2294_v49  ;;  %1471 = vst.msk [vmem:[#allocation5] sm:$0xff] %vm1470_vm6, %v2821_v52  ;;  %1472 = vst.msk [vmem:[#allocation5 + $0x8] sm:$0xff] %vm1470_vm6, %v2821_v52  ;;  %v2822_v53 = vmov 0.0  }
 0x256   : > { %v1216_v56 = vmul.f32 0.999995, %v1208_v54  ;;  %v1138_v57 = vadd.f32 %v2258_v55, %v2191_v44  ;;  %1473 = vst.msk [vmem:[#allocation7] sm:$0xff] %vm1470_vm6, %v2821_v52  ;;  %1474 = vst.msk [vmem:[#allocation7 + $0x8] sm:$0xff] %vm1470_vm6, %v2821_v52 }
 0x257   : > { %1475 = vst.msk [vmem:[#allocation6] sm:$0xff] %vm1470_vm6, %v2822_v53  ;;  %1476 = vst.msk [vmem:[#allocation6 + $0x8] sm:$0xff] %vm1470_vm6, %v2822_v53 }
 0x258   : > { %v1220_v59 = vand.u32 2147483647, %v1216_v56  ;;  %v1213_v60 = vadd.f32 %v2296_v58, %v1138_v57  ;;  %v1218_v15 = vmax.f32 %v1216_v56, 0.0  ;;  %1477 = vst.msk [vmem:[#allocation8] sm:$0xff] %vm1470_vm6, %v2822_v53  ;;  %1478 = vst.msk [vmem:[#allocation8 + $0x8] sm:$0xff] %vm1470_vm6, %v2822_v53 }
 0x25a   : > { %v1222_v61 = vsub.f32 0.0, %v1220_v59  ;;  %v1217_v62 = vmul.f32 0.999995, %v1213_v60 }
 0x25c   : > { %v1224_v63 = vmul.f32 1.442695, %v1222_v61  ;;  %v1221_v0 = vand.u32 2147483647, %v1217_v62  ;;  %v1219_v23 = vmax.f32 %v1217_v62, 0.0 }
 0x25e   : > { %2571 = vpow2.f32 %v1224_v63  ;;  %v1223_v1 = vsub.f32 0.0, %v1221_v0 }
 0x260   : > { %v1226_v2 = vmul.f32 1.442695, %v1223_v1 }
 0x262   : > { %2573 = vpow2.f32 %v1226_v2 }
 0x26b   : > { %v2572_v3 = vpop.eup %2571 }
 0x26c   : > { %v1228_v4 = vadd.f32 1.0, %v2572_v3  ;;  %v1231_v7 = vmul.f32 -0.5, %v2572_v3  ;;  %v1234_v10 = vand.u32 2147483647, %v2572_v3 }
 0x26e   : > { %2575 = vlog2.f32 %v1228_v4  ;;  %v1232_v8 = vadd.f32 1.0, %v1231_v7  ;;  %vm1235_vm0 = vcmp.lt.f32.partialorder %v1234_v10, 0.0004427343 }
 0x26f   : > { %v2574_v5 = vpop.eup %2573 }
 0x270   : > { %v1237_v6 = vadd.f32 1.0, %v2574_v5  ;;  %v1240_v9 = vmul.f32 -0.5, %v2574_v5  ;;  %v1233_v13 = vmul.f32 %v2572_v3, %v1232_v8  ;;  %v1243_v16 = vand.u32 2147483647, %v2574_v5 }
 0x272   : > { %2577 = vlog2.f32 %v1237_v6  ;;  %v1241_v14 = vadd.f32 1.0, %v1240_v9  ;;  %vm1244_vm2 = vcmp.lt.f32.partialorder %v1243_v16, 0.0004427343 }
 0x274   : > { %v1242_v21 = vmul.f32 %v2574_v5, %v1241_v14 }
 0x27b   : > { %v2576_v11 = vpop.eup %2575 }
 0x27c   : > { %v1230_v12 = vmul.f32 0.6931472, %v2576_v11 }
 0x27e   : > { %v1236_v17 = vsel %vm1235_vm0, %v1233_v13, %v1230_v12 }
 0x27f   : > { %v2578_v18 = vpop.eup %2577  ;;  %v1246_v19 = vadd.f32 %v1236_v17, %v1218_v15 }
 0x280   : > { %v1239_v20 = vmul.f32 0.6931472, %v2578_v18 }
 0x281   : > { %v1248_v22 = vmax.f32 %v1246_v19, 1e-05 }
 0x282   : > { %v1245_v24 = vsel %vm1244_vm2, %v1242_v21, %v1239_v20 }
 0x283   : > { %1251 = vst.msk [vmem:[%s3538_s10] sm:$0xff] %vm1250_vm1, %v1248_v22  ;;  %v1247_v25 = vadd.f32 %v1245_v24, %v1219_v23  ;;  %1266 = vrot.lane.b32.xlu0 %v1248_v22, %s2820_s1  ;;  %v1254_v27 = vsel %vm1253_vm3, %v1248_v22, 0.0 }
 0x285   : > { %v1249_v26 = vmax.f32 %v1247_v25, 1e-05 }
 0x287   : > { %1252 = vst.msk [vmem:[%s3538_s10 + $0x8] sm:$0xff] %vm1250_vm1, %v1249_v26  ;;  %1268 = vrot.lane.b32.xlu0 %v1249_v26, %s2820_s1  ;;  %v1257_v32 = vsel %vm1253_vm3, %v1249_v26, 0.0 }
 0x2a6   : > { %1255 = vadd.xlane.f32.xlu0 %v1254_v27 }
 0x2f5   : > { %v1267_v28 = vpop.permute.xlu0 %1266 }
 0x2f6   : > { %v1273_v29 = vsel %vm1272_vm4, %v1267_v28, 0.0 }
 0x2f7   : > { %1274 = vadd.xlane.f32.xlu1 %v1273_v29 }
 0x2f9   : > { %v1269_v30 = vpop.permute.xlu0 %1268 }
 0x2fa   : > { %v1276_v31 = vsel %vm1272_vm4, %v1269_v30, 0.0 }
 0x2fb   : > { %1277 = vadd.xlane.f32.xlu1 %v1276_v31 }
 0x2ff   : > { %1258 = vadd.xlane.f32.xlu1 %v1257_v32 }
 0x32f   : > { %v1256_v37 = vpop.xlane.xlu0 %1255 }
 0x330   : > { %2579 = vrcp.f32 %v1256_v37 }
 0x33d   : > { %v2580_v38 = vpop.eup %2579 }
 0x33e   : > { %v1261_v39 = vmul.f32 %v2580_v38, %v1248_v22 }
 0x340   : > { %2330 = vmatprep.mubr.msk.f32.mxu0 %vm1253_vm3, %v1261_v39 }
 0x380   : > { %v1275_v40 = vpop.xlane.xlu1 %1274 }
 0x381   : > { %2581 = vrcp.f32 %v1275_v40 }
 0x384   : > { %v1278_v41 = vpop.xlane.xlu1 %1277 }
 0x385   : > { %2583 = vrcp.f32 %v1278_v41 }
 0x388   : > { %v1259_v43 = vpop.xlane.xlu1 %1258 }
 0x389   : > { %2585 = vrcp.f32 %v1259_v43 }
 0x38e   : > { %v2582_v44 = vpop.eup %2581 }
 0x38f   : > { %v1280_v45 = vmul.f32 %v2582_v44, %v1248_v22 }
 0x391   : > { %1380 = vrot.lane.b32.xlu1 %v1280_v45, %s2820_s1 }
 0x392   : > { %v2584_v46 = vpop.eup %2583 }
 0x393   : > { %v1282_v47 = vmul.f32 %v2584_v46, %v1249_v26 }
 0x395   : > { %1382 = vrot.lane.b32.xlu1 %v1282_v47, %s2820_s1 }
 0x396   : > { %v2586_v48 = vpop.eup %2585 }
 0x397   : > { %v1263_v49 = vmul.f32 %v2586_v48, %v1249_v26 }
 0x399   : > { %2331 = vmatmul.mubr.msk.f32.vlgmr.msra.gmra.mxu0 %vm1253_vm3, %v1263_v49 }
 0x403   : > { %v1381_v50 = vpop.permute.xlu1 %1380 }
 0x404   : > { %2339 = vmatprep.mubr.msk.f32.mxu1 %vm1272_vm4, %v1381_v50 }
 0x407   : > { %v1383_v51 = vpop.permute.xlu1 %1382 }
 0x408   : > { %2340 = vmatmul.mubr.msk.f32.vlgmr.msra.gmra.mxu1 %vm1272_vm4, %v1383_v51 }
 0x459   : > { %v2332_v54 = vpop.f32.mrf.mxu0 }
 0x45a   : > { %v1371_v55 = vmul.f32 0.999995, %v2332_v54 }
 0x45b   : > { %v1361_v56 = vpop.f32.mrf.mxu0 }
 0x45c   : > { %1374 = vst.msk [vmem:[#allocation3 + $0x8] sm:$0xff] %vm1372_vm7, %v1371_v55  ;;  %v1370_v57 = vmul.f32 0.999995, %v1361_v56 }
 0x45e   : > { %1373 = vst.msk [vmem:[#allocation3] sm:$0xff] %vm1372_vm7, %v1370_v57 }
 0x4c8   : > { %v2341_v58 = vpop.f32.mrf.mxu1 }
 0x4c9   : > { %v1467_v59 = vmul.f32 0.999995, %v2341_v58 }
 0x4ca   : > { %v1457_v60 = vpop.f32.mrf.mxu1 }
 0x4cb   : > { %1469 = vst.msk [vmem:[#allocation4 + $0x8] sm:$0xff] %vm1372_vm7, %v1467_v59  ;;  %v1466_v61 = vmul.f32 0.999995, %v1457_v60 }
 0x4cd   : > { %1468 = vst.msk [vmem:[#allocation4] sm:$0xff] %vm1372_vm7, %v1466_v61 }
 0x4ce PF: > { %p2198_p12 = scmp.ne.s32.totalorder %s2803_s21, 1 }
 0x4d0   : > { %1482 = sbr.rel (%p2198_p12) target bundleno = 1879 (0x757), region = 151 }
 0x4d5   : > { %v2589_v62 = vld [vmem:[%s3071_s29 + $0x18] sm:$0xff]   ;;  %v2823_v63 = vmov 0.0   ;;  %v2590_v0 = vld [vmem:[%s3071_s29 + $0x10] sm:$0xff]   ;;  %vm2824_vm8 = vmmov 0   ;;  %v2591_v1 = vld [vmem:[%s3071_s29 + $0x8] sm:$0xff]   ;;  %vm1518_vm9 = vcmask 523264  }
 0x4d6   : > { %2342 = vmatprep.subr.bf16.mxu0 %v2823_v63  ;;  %2354 = vmatprep.subr.bf16.mxu1 %v2823_v63  ;;  %v2592_v2 = vld [vmem:[%s3071_s29] sm:$0xff]   ;;  %v1563_v5 = vld [vmem:[#allocation4] sm:$0xff]  ;;  %v1564_v6 = vld [vmem:[#allocation4 + $0x8] sm:$0xff]  ;;  %v2825_v17 = vmov 0   ;;  %vm1650_vm10 = vcmask 7168  }
 0x4d7   : > { %2343 = vmatpush3.bf16.msra.mxu0 %v2589_v62  ;;  %2355 = vmatpush3.bf16.msra.mxu1 %v2589_v62  ;;  %v1491_v3 = vld [vmem:[#allocation3] sm:$0xff]  ;;  %v1492_v4 = vld [vmem:[#allocation3 + $0x8] sm:$0xff]  ;;  %v1565_v8 = vpack.c.bf16 %v1564_v6, %v1563_v5  ;;  %v1618_v55 = vld [vmem:[#allocation6] sm:$0xff] }
 0x4d8   : > { %2344 = vmatprep.subr.bf16.mxu0 %v2823_v63  ;;  %2356 = vmatprep.subr.bf16.mxu1 %v2823_v63  ;;  %v1493_v7 = vpack.c.bf16 %v1492_v4, %v1491_v3  ;;  %v1655_v18 = vld [vmem:[#allocation7] sm:$0xff]  ;;  %v1656_v24 = vld [vmem:[#allocation7 + $0x8] sm:$0xff]  ;;  %v1619_v58 = vld [vmem:[#allocation6 + $0x8] sm:$0xff] }
 0x4d9   : > { %2350 = vmatprep.mubr.msk.bf16.mxu0 %vm2824_vm8, %v2823_v63  ;;  %2362 = vmatprep.mubr.msk.bf16.mxu1 %vm2824_vm8, %v2823_v63  ;;  %v1610_v19 = vld [vmem:[#allocation5] sm:$0xff]  ;;  %v1611_v25 = vld [vmem:[#allocation5 + $0x8] sm:$0xff]  ;;  %v1663_v61 = vld [vmem:[#allocation8] sm:$0xff] }
 0x4da   : > { %2588 = vset.pattern.permute.xlu1 %v2825_v17  ;;  %2587 = vset.pattern.permute.xlu0 %v2825_v17  ;;  %v1664_v5 = vld [vmem:[#allocation8 + $0x8] sm:$0xff] }
 0x4db   : > { %2345 = vmatpush3.bf16.msra.mxu0 %v2590_v0  ;;  %2357 = vmatpush3.bf16.msra.mxu1 %v2590_v0 }
 0x4dc   : > { %2346 = vmatprep.subr.bf16.mxu0 %v2823_v63  ;;  %2358 = vmatprep.subr.bf16.mxu1 %v2823_v63 }
 0x4df   : > { %2347 = vmatpush3.bf16.msra.mxu0 %v2591_v1  ;;  %2359 = vmatpush3.bf16.msra.mxu1 %v2591_v1 }
 0x4e0   : > { %2348 = vmatprep.subr.bf16.mxu0 %v2823_v63  ;;  %2360 = vmatprep.subr.bf16.mxu1 %v2823_v63 }
 0x4e3   : > { %2349 = vmatpush3.bf16.msra.mxu0 %v2592_v2  ;;  %2361 = vmatpush3.bf16.msra.mxu1 %v2592_v2 }
 0x4e6   : > { %2351 = vmatmul.mubr.msk.bf16.vlgmr.msra.gmra.mxu0 %vm1518_vm9, %v1493_v7  ;;  %2363 = vmatmul.mubr.msk.bf16.vlgmr.msra.gmra.mxu1 %vm1518_vm9, %v1565_v8 }
 0x5a6   : > { %v1556_v9 = vpop.f32.mrf.mxu0  ;;  %v1603_v10 = vpop.f32.mrf.mxu1 }
 0x5a7   : > { %1657 = vmax.xlane.f32.xlu1 %v1603_v10  ;;  %1612 = vmax.xlane.f32.xlu0 %v1556_v9 }
 0x5a8   : > { %v2352_v11 = vpop.f32.mrf.mxu0  ;;  %v2364_v12 = vpop.f32.mrf.mxu1 }
 0x5aa   : > { %v1559_v13 = vpop.f32.mrf.mxu0  ;;  %v1606_v14 = vpop.f32.mrf.mxu1 }
 0x5ab   : > { %1659 = vmax.xlane.f32.xlu1 %v1606_v14  ;;  %1614 = vmax.xlane.f32.xlu0 %v1559_v13 }
 0x5ac   : > { %v2353_v15 = vpop.f32.mrf.mxu0  ;;  %v2365_v16 = vpop.f32.mrf.mxu1 }
 0x630   : > { %v1658_v20 = vpop.xlane.xlu1 %1657  ;;  %v1613_v21 = vpop.xlane.xlu0 %1612 }
 0x631   : > { %v1661_v22 = vmax.f32 %v1655_v18, %v1658_v20  ;;  %v1616_v23 = vmax.f32 %v1610_v19, %v1613_v21 }
 0x633   : > { %v1665_v26 = vsub.f32 %v1655_v18, %v1661_v22  ;;  %1697 = vst.msk [vmem:[#allocation7] sm:$0xff] %vm1650_vm10, %v1661_v22  ;;  %v1620_v27 = vsub.f32 %v1610_v19, %v1616_v23  ;;  %1653 = vst.msk [vmem:[#allocation5] sm:$0xff] %vm1650_vm10, %v1616_v23  ;;  %1675 = vperm.xlu1 %2588, %v1661_v22   ;;  %1630 = vperm.xlu0 %2587, %v1616_v23  }
 0x634   : > { %v1660_v28 = vpop.xlane.xlu1 %1659  ;;  %v1615_v29 = vpop.xlane.xlu0 %1614 }
 0x635   : > { %v1662_v30 = vmax.f32 %v1656_v24, %v1660_v28  ;;  %v1617_v31 = vmax.f32 %v1611_v25, %v1615_v29  ;;  %v1622_v50 = vmul.f32 1.442695, %v1620_v27  ;;  %v1667_v52 = vmul.f32 1.442695, %v1665_v26 }
 0x637   : > { %v1666_v32 = vsub.f32 %v1656_v24, %v1662_v30  ;;  %1698 = vst.msk [vmem:[#allocation7 + $0x8] sm:$0xff] %vm1650_vm10, %v1662_v30  ;;  %v1621_v33 = vsub.f32 %v1611_v25, %v1617_v31  ;;  %1654 = vst.msk [vmem:[#allocation5 + $0x8] sm:$0xff] %vm1650_vm10, %v1617_v31  ;;  %1635 = vperm.xlu1 %2588, %v1617_v31  }
 0x639   : > { %v1624_v51 = vmul.f32 1.442695, %v1621_v33  ;;  %v1669_v53 = vmul.f32 1.442695, %v1666_v32 }
 0x63b   : > { %1680 = vperm.xlu1 %2588, %v1662_v30  }
 0x6ae   : > { %v1676_v34 = vpop.permute.xlu1 %1675  ;;  %v1631_v35 = vpop.permute.xlu0 %1630 }
 0x6af   : > { %v1638_v36 = vsub.f32 %v1556_v9, %v1631_v35  ;;  %v1683_v37 = vsub.f32 %v1603_v10, %v1676_v34 }
 0x6b1   : > { %v1640_v38 = vmul.f32 1.442695, %v1638_v36  ;;  %v1685_v41 = vmul.f32 1.442695, %v1683_v37 }
 0x6b2   : > { %v1636_v39 = vpop.permute.xlu1 %1635 }
 0x6b3   : > { %v1639_v40 = vsub.f32 %v1559_v13, %v1636_v39  ;;  %2593 = vpow2.f32 %v1640_v38 }
 0x6b5   : > { %v1642_v42 = vmul.f32 1.442695, %v1639_v40 }
 0x6b6   : > { %v1681_v43 = vpop.permute.xlu1 %1680 }
 0x6b7   : > { %2595 = vpow2.f32 %v1642_v42  ;;  %v1684_v44 = vsub.f32 %v1606_v14, %v1681_v43 }
 0x6b8   : > { %2597 = vpow2.f32 %v1685_v41 }
 0x6b9   : > { %v1687_v45 = vmul.f32 1.442695, %v1684_v44 }
 0x6bb   : > { %2599 = vpow2.f32 %v1687_v45 }
 0x6bc   : > { %2601 = vpow2.f32 %v1622_v50 }
 0x6bd   : > { %2603 = vpow2.f32 %v1624_v51 }
 0x6be   : > { %2605 = vpow2.f32 %v1667_v52 }
 0x6bf   : > { %2607 = vpow2.f32 %v1669_v53 }
 0x6c0   : > { %v2594_v46 = vpop.eup %2593 }
 0x6c1   : > { %1644 = vadd.xlane.f32.xlu1 %v2594_v46 }
 0x6c4   : > { %v2596_v47 = vpop.eup %2595 }
 0x6c5   : > { %v2598_v48 = vpop.eup %2597  ;;  %1646 = vadd.xlane.f32.xlu0 %v2596_v47 }
 0x6c6   : > { %1689 = vadd.xlane.f32.xlu1 %v2598_v48 }
 0x6c8   : > { %v2600_v49 = vpop.eup %2599 }
 0x6c9   : > { %v2602_v54 = vpop.eup %2601 }
 0x6ca   : > { %1691 = vadd.xlane.f32.xlu1 %v2600_v49  ;;  %v2604_v56 = vpop.eup %2603  ;;  %v1626_v57 = vmul.f32 %v2602_v54, %v1618_v55 }
 0x6cb   : > { %v2606_v59 = vpop.eup %2605  ;;  %v1627_v63 = vmul.f32 %v2604_v56, %v1619_v58 }
 0x6cc   : > { %v1671_v0 = vmul.f32 %v2606_v59, %v1663_v61  ;;  %v2608_v2 = vpop.eup %2607 }
 0x6cd   : > { %v1672_v7 = vmul.f32 %v2608_v2, %v1664_v5 }
 0x74a   : > { %v1645_v60 = vpop.xlane.xlu1 %1644 }
 0x74b   : > { %v1648_v62 = vadd.f32 %v1645_v60, %v1626_v57 }
 0x74d   : > { %1651 = vst.msk [vmem:[#allocation6] sm:$0xff] %vm1650_vm10, %v1648_v62 }
 0x74e   : > { %v1647_v1 = vpop.xlane.xlu0 %1646 }
 0x74f   : > { %v1690_v3 = vpop.xlane.xlu1 %1689  ;;  %v1649_v4 = vadd.f32 %v1647_v1, %v1627_v63 }
 0x750   : > { %v1693_v6 = vadd.f32 %v1690_v3, %v1671_v0 }
 0x751   : > { %1652 = vst.msk [vmem:[#allocation6 + $0x8] sm:$0xff] %vm1650_vm10, %v1649_v4 }
 0x752   : > { %1695 = vst.msk [vmem:[#allocation8] sm:$0xff] %vm1650_vm10, %v1693_v6 }
 0x753   : > { %v1692_v8 = vpop.xlane.xlu1 %1691 }
 0x754   : > { %v1694_v9 = vadd.f32 %v1692_v8, %v1672_v7 }
 0x756   : > { %1696 = vst.msk [vmem:[#allocation8 + $0x8] sm:$0xff] %vm1650_vm10, %v1694_v9 }
 0x757 PF: > { %p2205_p13 = scmp.ne.s32.totalorder %s2803_s21, 2 }
 0x759   : > { %1702 = sbr.rel (%p2205_p13) target bundleno = 2122 (0x84a), region = 155 }
 0x75e   : > { %v2611_v10 = vld [vmem:[%s3071_s29 + $0x18] sm:$0xff]   ;;  %v2826_v11 = vmov 0.0   ;;  %v2612_v12 = vld [vmem:[%s3071_s29 + $0x10] sm:$0xff]   ;;  %vm2827_vm11 = vmmov 0   ;;  %v2828_v13 = vmov 0   ;;  %v2613_v16 = vld [vmem:[%s3071_s29 + $0x8] sm:$0xff]  }
 0x75f   : > { %2366 = vmatprep.subr.bf16.mxu0 %v2826_v11  ;;  %2378 = vmatprep.subr.bf16.mxu1 %v2826_v11  ;;  %v1870_v14 = vld [vmem:[#allocation7] sm:$0xff]  ;;  %v1831_v17 = vld [vmem:[#allocation6 + $0x8] sm:$0xff]  ;;  %v1830_v18 = vld [vmem:[#allocation6] sm:$0xff]  ;;  %vm1738_vm12 = vcmask 523264  }
 0x760   : > { %2367 = vmatpush3.bf16.msra.mxu0 %v2611_v10  ;;  %2379 = vmatpush3.bf16.msra.mxu1 %v2611_v10  ;;  %v1838_v15 = vld [vmem:[#allocation5] sm:$0xff]  ;;  %2615 = vrcp.f32 %v1831_v17  ;;  %v1835_v19 = vld [vmem:[#allocation8 + $0x8] sm:$0xff]  ;;  %v1834_v20 = vld [vmem:[#allocation8] sm:$0xff] }
 0x761   : > { %2368 = vmatprep.subr.bf16.mxu0 %v2826_v11  ;;  %2380 = vmatprep.subr.bf16.mxu1 %v2826_v11  ;;  %v2614_v21 = vld [vmem:[%s3071_s29] sm:$0xff]   ;;  %2617 = vrcp.f32 %v1830_v18  ;;  %v1783_v26 = vld [vmem:[#allocation4] sm:$0xff]  ;;  %v1784_v27 = vld [vmem:[#allocation4 + $0x8] sm:$0xff] }
 0x762   : > { %2374 = vmatprep.mubr.msk.bf16.mxu0 %vm2827_vm11, %v2826_v11  ;;  %2386 = vmatprep.mubr.msk.bf16.mxu1 %vm2827_vm11, %v2826_v11  ;;  %v1711_v22 = vld [vmem:[#allocation3] sm:$0xff]  ;;  %v1871_v23 = vld [vmem:[#allocation7 + $0x8] sm:$0xff]  ;;  %2619 = vrcp.f32 %v1835_v19  ;;  %v1785_v29 = vpack.c.bf16 %v1784_v27, %v1783_v26 }
 0x763   : > { %2610 = vset.pattern.permute.xlu1 %v2828_v13  ;;  %2609 = vset.pattern.permute.xlu0 %v2828_v13  ;;  %v1839_v24 = vld [vmem:[#allocation5 + $0x8] sm:$0xff]  ;;  %2621 = vrcp.f32 %v1834_v20 }
 0x764   : > { %2369 = vmatpush3.bf16.msra.mxu0 %v2612_v12  ;;  %2381 = vmatpush3.bf16.msra.mxu1 %v2612_v12  ;;  %v1712_v25 = vld [vmem:[#allocation3 + $0x8] sm:$0xff] }
 0x765   : > { %2370 = vmatprep.subr.bf16.mxu0 %v2826_v11  ;;  %2382 = vmatprep.subr.bf16.mxu1 %v2826_v11  ;;  %v1713_v28 = vpack.c.bf16 %v1712_v25, %v1711_v22 }
 0x766   : > { %1874 = vperm.xlu1 %2610, %v1870_v14   ;;  %1842 = vperm.xlu0 %2609, %v1838_v15  }
 0x768   : > { %2371 = vmatpush3.bf16.msra.mxu0 %v2613_v16  ;;  %2383 = vmatpush3.bf16.msra.mxu1 %v2613_v16 }
 0x769   : > { %2372 = vmatprep.subr.bf16.mxu0 %v2826_v11  ;;  %2384 = vmatprep.subr.bf16.mxu1 %v2826_v11 }
 0x76a   : > { %1879 = vperm.xlu1 %2610, %v1871_v23   ;;  %1847 = vperm.xlu0 %2609, %v1839_v24  }
 0x76c   : > { %2373 = vmatpush3.bf16.msra.mxu0 %v2614_v21  ;;  %2385 = vmatpush3.bf16.msra.mxu1 %v2614_v21 }
 0x76d   : > { %v2616_v30 = vpop.eup %2615 }
 0x76e   : > { %v2618_v31 = vpop.eup %2617  ;;  %1863 = vperm.xlu1 %2610, %v2616_v30  }
 0x76f   : > { %2375 = vmatmul.mubr.msk.bf16.vlgmr.msra.gmra.mxu0 %vm1738_vm12, %v1713_v28  ;;  %2387 = vmatmul.mubr.msk.bf16.vlgmr.msra.gmra.mxu1 %vm1738_vm12, %v1785_v29  ;;  %v2620_v32 = vpop.eup %2619 }
 0x770   : > { %1858 = vperm.xlu0 %2609, %v2618_v31   ;;  %v2622_v33 = vpop.eup %2621 }
 0x772   : > { %1895 = vperm.xlu1 %2610, %v2620_v32  }
 0x774   : > { %1890 = vperm.xlu0 %2609, %v2622_v33  }
 0x7e1   : > { %v1875_v34 = vpop.permute.xlu1 %1874  ;;  %v1843_v35 = vpop.permute.xlu0 %1842 }
 0x7e5   : > { %v1880_v42 = vpop.permute.xlu1 %1879  ;;  %v1848_v43 = vpop.permute.xlu0 %1847 }
 0x7e9   : > { %v1864_v55 = vpop.permute.xlu1 %1863 }
 0x7eb   : > { %v1859_v54 = vpop.permute.xlu0 %1858 }
 0x7ed   : > { %v1896_v63 = vpop.permute.xlu1 %1895 }
 0x7ef   : > { %v1891_v58 = vpop.permute.xlu0 %1890 }
 0x82f   : > { %v1776_v36 = vpop.f32.mrf.mxu0  ;;  %v1823_v37 = vpop.f32.mrf.mxu1 }
 0x830   : > { %v1850_v38 = vsub.f32 %v1776_v36, %v1843_v35  ;;  %v1882_v39 = vsub.f32 %v1823_v37, %v1875_v34 }
 0x831   : > { %v2376_v40 = vpop.f32.mrf.mxu0  ;;  %v2388_v41 = vpop.f32.mrf.mxu1 }
 0x832   : > { %v1852_v44 = vmul.f32 1.442695, %v1850_v38  ;;  %v1884_v45 = vmul.f32 1.442695, %v1882_v39 }
 0x833   : > { %v1779_v46 = vpop.f32.mrf.mxu0  ;;  %v1826_v47 = vpop.f32.mrf.mxu1 }
 0x834   : > { %2623 = vpow2.f32 %v1852_v44  ;;  %v1851_v48 = vsub.f32 %v1779_v46, %v1848_v43  ;;  %v1883_v49 = vsub.f32 %v1826_v47, %v1880_v42 }
 0x835   : > { %2625 = vpow2.f32 %v1884_v45  ;;  %v2377_v50 = vpop.f32.mrf.mxu0  ;;  %v2389_v51 = vpop.f32.mrf.mxu1 }
 0x836   : > { %v1854_v52 = vmul.f32 1.442695, %v1851_v48  ;;  %v1886_v53 = vmul.f32 1.442695, %v1883_v49 }
 0x838   : > { %2627 = vpow2.f32 %v1854_v52 }
 0x839   : > { %2629 = vpow2.f32 %v1886_v53 }
 0x841   : > { %v2624_v56 = vpop.eup %2623 }
 0x842   : > { %v2626_v57 = vpop.eup %2625  ;;  %v1866_v59 = vmul.f32 %v2624_v56, %v1859_v54 }
 0x843   : > { %v1898_v60 = vmul.f32 %v2626_v57, %v1891_v58 }
 0x844   : > { %1868 = vst [vmem:[%s3073_s3] sm:$0xff] %v1866_v59 }
 0x845   : > { %v2628_v61 = vpop.eup %2627  ;;  %1900 = vst [vmem:[%s3075_s16] sm:$0xff] %v1898_v60 }
 0x846   : > { %v2630_v62 = vpop.eup %2629  ;;  %v1867_v0 = vmul.f32 %v2628_v61, %v1864_v55 }
 0x847   : > { %v1899_v1 = vmul.f32 %v2630_v62, %v1896_v63 }
 0x848   : > { %1869 = vst [vmem:[%s3073_s3 + $0x8] sm:$0xff] %v1867_v0 }
 0x849   : > { %1901 = vst [vmem:[%s3075_s16 + $0x8] sm:$0xff] %v1899_v1 }
 0x84a PF: > { %p1924_p0 = scmp.eq.s32.totalorder %s2803_s21, 2  ;;  %s1934_s29 = sshll.u32 %s3073_s3, 4  ;;  %s3371_s29 = int_to_ptr.vmem [resolvable:$true] %s1934_s29 }
 0x84b   : > { %s3542_s23 = sld [smem:[#allocation35_spill]]  ;;  %s1908_s18 = scalar_lea.sflag [#allocation12], %s3061_s11 }
 0x84c   : > { %s3571_s20 = smov (!%p1924_p0, %s2799_s20), 0  ;;  %s2657_s8 = scalar_lea.vmem %s3371_s29, 256 }
 0x84d   : > { %s3503_s1 = sshll.u32 %s3571_s20, 7  ;;  %p2658_p1 = scmp.ne.s32.totalorder %s3371_s29, %s2657_s8 }
 0x84e   : > { %p3544_p2 = scmp.ne.s32.totalorder %s3524_s9, 0  ;;  %s2829_s21 = smov [#allocation14]  }
 0x84f   : > { %s2661_s3 = sshll.u32 %s2829_s21, 4  ;;  %s2662_s3 = int_to_ptr.vmem [resolvable:$false] %s2661_s3 }
 0x850   : > { %p2659_p4 = pnand %p2658_p1, %p3544_p2  ;;  %s2663_s12 = scalar_lea.vmem %s2662_s3, 512 }
 0x851   : > { %s3543_s6 = smov %s3542_s23  ;;  %s3379_s22 = scalar_lea.hbm %s3542_s23, %s3503_s1 }
 0x852   : > { %p2660_p6 = pneg %p2659_p4  ;;  %p2664_p8 = scmp.lt.s32.totalorder %s3371_s29, %s2662_s3 }
 0x853   : > { %p2665_p10 = scmp.lt.s32.totalorder %s2663_s12, %s2657_s8 }
 0x855   : > { %p2666_p5 = por %p2665_p10, %p2664_p8 }
 0x857   : > { %p2667_p3 = pnand %p2666_p5, %p2660_p6 }
 0x859   : > { %2670 = shalt.err (!%p2667_p3)
}
 0x85a   : > { %s2671_s4 = scalar_lea.hbm %s3379_s22, 256  ;;  %s2675_s23 = scalar_lea.hbm %s3543_s6, 512 }
 0x85b   : > { %p2672_p7 = scmp.ne.s32.totalorder %s3379_s22, %s2671_s4  ;;  %p2676_p12 = scmp.lt.s32.totalorder %s3379_s22, %s3543_s6 }
 0x85c   : > { %p2677_p13 = scmp.lt.s32.totalorder %s2675_s23, %s2671_s4 }
 0x85d   : > { %p2673_p9 = pnand %p2672_p7, %p3544_p2 }
 0x85e   : > { %p2678_p0 = por %p2677_p13, %p2676_p12 }
 0x85f   : > { %p2674_p11 = pneg %p2673_p9 }
 0x861   : > { %p2679_p1 = pnand %p2678_p0, %p2674_p11 }
 0x863   : > { %2682 = shalt.err (!%p2679_p1)
}
 0x864   : > { %s2830_s8 = smov 128   ;;  %s2831_s3 = smov 256  }
 0x865   : > { %s2832_s12 = smov 8   ;;  %s3545_s1 = sshll.u32 %s3571_s20, 7 }
 0x866   : > { %2394 = dma.vmem_to_hbm [thread:$0]  (%p3544_p2), %s3371_s29, 256, %s3379_s22, %s1908_s18, %s2830_s8, %s2831_s3, %s2832_s12  }
 0x867   : > { %s3546_s30 = sld [smem:[#allocation36_spill]]  ;;  %s1954_s21 = sshll.u32 %s3075_s16, 4  ;;  %s3415_s21 = int_to_ptr.vmem [resolvable:$true] %s1954_s21 }
 0x868   : > { %s1913_s0 = scalar_lea.sflag [#allocation16], %s3061_s11  ;;  %s2683_s2 = scalar_lea.vmem %s3415_s21, 256 }
 0x869   : > { %p2684_p4 = scmp.ne.s32.totalorder %s3415_s21, %s2683_s2  ;;  %s2833_s5 = smov [#allocation15]  }
 0x86a   : > { %s2687_s29 = sshll.u32 %s2833_s5, 4  ;;  %s2688_s29 = int_to_ptr.vmem [resolvable:$false] %s2687_s29 }
 0x86b   : > { %p2685_p6 = pnand %p2684_p4, %p3544_p2  ;;  %s2689_s20 = scalar_lea.vmem %s2688_s29, 512 }
 0x86c   : > { %p2690_p10 = scmp.lt.s32.totalorder %s3415_s21, %s2688_s29  ;;  %p2691_p5 = scmp.lt.s32.totalorder %s2689_s20, %s2683_s2 }
 0x86d   : > { %s3412_s23 = scalar_lea.hbm %s3546_s30, %s3545_s1  ;;  %p2686_p8 = pneg %p2685_p6 }
 0x86e   : > { %p2692_p3 = por %p2691_p5, %p2690_p10 }
 0x870   : > { %p2693_p7 = pnand %p2692_p3, %p2686_p8 }
 0x872   : > { %2696 = shalt.err (!%p2693_p7)
}
 0x873   : > { %s2697_s16 = scalar_lea.hbm %s3412_s23, 256  ;;  %s2701_s5 = scalar_lea.hbm %s3546_s30, 512 }
 0x874   : > { %p2698_p9 = scmp.ne.s32.totalorder %s3412_s23, %s2697_s16  ;;  %p2702_p13 = scmp.lt.s32.totalorder %s3412_s23, %s3546_s30 }
 0x875   : > { %p2703_p0 = scmp.lt.s32.totalorder %s2701_s5, %s2697_s16 }
 0x876   : > { %p2699_p11 = pnand %p2698_p9, %p3544_p2 }
 0x877   : > { %p2704_p1 = por %p2703_p0, %p2702_p13 }
 0x878   : > { %p2700_p12 = pneg %p2699_p11 }
 0x87a   : > { %p2705_p4 = pnand %p2704_p1, %p2700_p12 }
 0x87c   : > { %2708 = shalt.err (!%p2705_p4)
}
 0x87d   : > { %2395 = dma.vmem_to_hbm [thread:$0]  (%p3544_p2), %s3415_s21, 256, %s3412_s23, %s1913_s0, %s2830_s8, %s2831_s3, %s2832_s12  }
 0x87e PF: > { %p2411_p6 = scmp.ge.s32.totalorder %s2815_s24, 2  ;;  %s1977_s2 = sand.u32 1, %s2771_s13  }
 0x87f   : > { %p3547_p8 = scmp.ne.s32.totalorder %s3527_s26, 0  ;;  %s1978_s4 = scalar_lea.sflag [#allocation12], %s1977_s2 }
 0x881   : > { %p2403_p10 = pnand %p2411_p6, %p3547_p8 }
 0x883   : > { %p2404_p5 = pneg %p2403_p10 }
 0x885   : > { %2762 = dma.done.wait (%p2404_p5), %s1978_s4, 256  }
 0x886   : > { %2764 = vsyncadd (%p2404_p5), %s1978_s4, 4294967040  ;;  %s1987_s25 = scalar_lea.sflag [#allocation16], %s1977_s2 }
 0x887   : > { %2766 = dma.done.wait (%p2404_p5), %s1987_s25, 256  }
 0x888   : > { %2768 = vsyncadd (%p2404_p5), %s1987_s25, 4294967040  ;;  %s28_s24 = sadd.s32 1, %s2815_s24   ;;  %s3548_s0 = sld [smem:[#allocation26_spill]] }
 0x889   : > { %p25_p3 = scmp.ge.s32.totalorder %s28_s24, 8   ;;  %s3549_s9 = sld [smem:[#allocation25_spill]] }
 0x88a   : > { %s3550_s8 = sld [smem:[#allocation24_spill]]  ;;  %s3555_s13 = smov %s2775_s14 }
 0x88b   : > { %s3551_s20 = sld [smem:[#allocation20_spill]]  ;;  %s3556_s14 = smov %s2779_s15 }
 0x88c   : > { %s3552_s21 = sld [smem:[#allocation21_spill]]  ;;  %s3558_s16 = smov %s2787_s17 }
 0x88d   : > { %s3553_s22 = sld [smem:[#allocation22_spill]]  ;;  %s3560_s18 = smov %s2795_s19 }
 0x88e   : > { %s3554_s23 = sld [smem:[#allocation23_spill]]  ;;  %s3557_s15 = smov %s3548_s0 }
 0x88f   : > { %s3559_s17 = smov %s3549_s9  ;;  %27 = sbr.rel (!%p25_p3) target bundleno = 21 (0x15), region = 236 }
 0x890   : > { %s3561_s19 = smov %s3550_s8 }
 0x894   :  { %1992 = vsyncpa [#allocation11], 1 }
 0x895   :  { %1994 = vsyncpa [#allocation11 + $0x1], 1 }
 0x896   :  { %1995 = vsyncpa [#allocation12], 1 }
 0x897   :  { %1997 = vsyncpa [#allocation12 + $0x1], 1 }
 0x898   :  { %1998 = vsyncpa [#allocation16], 1 }
 0x899   :  { %2000 = vsyncpa [#allocation16 + $0x1], 1 }

</bundles_post_ra>
